<compile_context>
chip_gen: v7x
topology: tpu7x:2x2x1
jax: 0.10.0
libtpu: 0.0.40
codegen_flags: <defaults>
</compile_context>

<pallas_src>
import functools

import jax
import jax.numpy as jnp
from jax import lax
from jax.experimental import pallas as pl
from jax.experimental.pallas import tpu as pltpu

S = 11            # self.feature_samples
P = S * S         # 121 sampled points
P_PAD = 128       # padded to the TPU lane width
_EPS = 1e-10      # F.normalize(dim=1, eps=1e-10)


def _round_up(x, m):
    return (x + m - 1) // m * m


# ----------------------------------------------------------------------------
# Pallas kernel.  One grid step = tb batch elements of BOTH helper() calls.
# Per step it writes one (1, 8, P_PAD) lane-dense block of partial sums
# (padded lanes and rows 6,7 are exactly zero):
#   row 0: S1_neg  = sum_pq clamp(cd,0) * (fd - mean_q fd)
#   row 1: S2_neg  = sum_pq clamp(cd,0)
#   row 2: S3_neg  = sum_pq fd
#   rows 3..5: the same three sums for the self pair.
# The wrapper reduces over grid steps / lanes and combines into the loss.
# ----------------------------------------------------------------------------
def _corr_loss_kernel(maps_ref, w1_ref, w2_ref, out_ref, *, cf, cc, p_valid):
    tb = maps_ref.shape[0]
    cfc = cf + cc
    eps_sq = _EPS * _EPS
    inv_p = 1.0 / p_valid
    dn_nt = (((1,), (1,)), ((), ()))   # contract trailing (h*w) dims
    dn_tn = (((0,), (0,)), ((), ()))   # contract leading (channel) dims

    def normalize(x):
        # F.normalize(t, dim=1): v * rsqrt(max(||v||^2, eps^2))
        ss = jnp.sum(x * x, axis=0, keepdims=True)              # (1, P_PAD)
        return x * lax.rsqrt(jnp.maximum(ss, eps_sq))

    def pair_partials(fa, fb, ca, cb):
        # fa/fb: normalized feats (Cf, P_PAD); ca/cb: normalized code (Cc, P_PAD)
        sa = jnp.sum(fa, axis=1, keepdims=True)                 # (Cf, 1)
        sb = jnp.sum(fb, axis=1, keepdims=True)                 # (Cf, 1)
        # S3 row: t3[q] = sum_p fd[p,q] = sum_c sa[c] * fb[c,q]   (no fd needed)
        t3 = jnp.sum(fb * sa, axis=0, keepdims=True)            # (1, P_PAD)
        # code correlation; cd is dead as soon as it is clamped
        cd = lax.dot_general(ca, cb, dn_tn, preferred_element_type=jnp.float32)
        cd_cl = jnp.maximum(cd, 0.0)                            # zero_clamp
        t2 = jnp.sum(cd_cl, axis=0, keepdims=True)              # (1, P_PAD)
        # recentered feature correlation, fused on the MXU:
        #   fd[p,q] - mean_q fd[p,:] == sum_c fa[c,p]*(fb[c,q] - sum_q' fb[c,q']/P)
        fdm = lax.dot_general(fa, fb - sb * inv_p, dn_tn,
                              preferred_element_type=jnp.float32)
        t1 = jnp.sum(cd_cl * fdm, axis=0, keepdims=True)        # (1, P_PAD)
        return t1, t2, t3

    def body(b, carry):
        # One packed block holds [f1 | c1 | neg_f | neg_c] along channels.
        m1 = maps_ref[b, pl.ds(0, cfc), :].astype(jnp.float32)     # (Cf+Cc, HW_P)
        m2 = maps_ref[b, pl.ds(cfc, cfc), :].astype(jnp.float32)   # (Cf+Cc, HW_P)
        w1 = w1_ref[b]                                             # (P_PAD, HW_P)
        w2 = w2_ref[b]
        # bilinear grid_sample == interpolation-matrix matmul on the MXU.
        s1 = lax.dot_general(m1, w1, dn_nt, preferred_element_type=jnp.float32)
        s2 = lax.dot_general(m2, w2, dn_nt, preferred_element_type=jnp.float32)
        f1n = normalize(s1[:cf])
        c1n = normalize(s1[cf:])
        nfn = normalize(s2[:cf])
        ncn = normalize(s2[cf:])
        # pair-at-a-time: the neg pair is fully reduced before the self pair.
        d = pair_partials(f1n, nfn, c1n, ncn) + pair_partials(f1n, f1n, c1n, c1n)
        return tuple(a + x for a, x in zip(carry, d))

    init = tuple(jnp.zeros((1, P_PAD), jnp.float32) for _ in range(6))
    if tb == 1:
        sums = body(0, init)
    else:
        # rolled loop: keeps per-iteration live ranges (and spills) bounded.
        sums = lax.fori_loop(0, tb, body, init, unroll=False)

    # Single lane-dense full-tile store per grid step (rows 6,7 are padding).
    out_ref[0] = jnp.concatenate(
        list(sums) + [jnp.zeros((2, P_PAD), jnp.float32)], axis=0)


def _pick_tb(n, per_batch_bytes, cap=8, vmem_budget=8 * 1024 * 1024):
    # Divisor of n (no padded-batch work), capped by a VMEM budget, and giving
    # >= 2 grid steps when n >= 2 so "parallel" can shard across v7x's 2 TCs.
    cap = min(cap, max(1, vmem_budget // max(per_batch_bytes, 1)))
    cap = max(1, min(cap, n))
    best = 1
    for d in range(1, cap + 1):
        if n % d == 0 and (n // d >= 2 or n <= 1):
            best = d
    return best


def _run_corr_kernel(maps, w1, w2, *, self_shift, neg_shift, n_valid,
                     cf, cc, tb_cap=8):
    n, c_tot, hw_p = maps.shape
    per_batch_bytes = (c_tot + 2 * P_PAD) * hw_p * 4
    tb = _pick_tb(n, per_batch_bytes, cap=tb_cap)
    num_steps = n // tb

    kern = functools.partial(_corr_loss_kernel, cf=cf, cc=cc, p_valid=float(P))

    out = pl.pallas_call(
        kern,
        out_shape=jax.ShapeDtypeStruct((num_steps, 8, P_PAD), jnp.float32),
        grid_spec=pltpu.PrefetchScalarGridSpec(
            num_scalar_prefetch=0,
            grid=(num_steps,),
            in_specs=[
                pl.BlockSpec((tb, c_tot, hw_p), lambda i: (i, 0, 0)),
                pl.BlockSpec((tb, P_PAD, hw_p), lambda i: (i, 0, 0)),
                pl.BlockSpec((tb, P_PAD, hw_p), lambda i: (i, 0, 0)),
            ],
            out_specs=pl.BlockSpec((1, 8, P_PAD), lambda i: (i, 0, 0)),
        ),
        compiler_params=pltpu.CompilerParams(
            dimension_semantics=("parallel",)),
    )(maps, w1, w2)

    sums = jnp.sum(out, axis=(0, 2))            # (8,) ; rows 6,7 are zero
    count = float(n_valid) * P * P

    def pair_mean(s1, s2, s3, shift):
        # fd_adj = fd - mean_q(fd) - mean(fd - mean_q(fd)) + old_mean; the
        # middle global mean is exactly zero, so
        #   mean(loss) = (-S1 - (old_mean - shift) * S2) / count.
        old_mean = s3 / count
        return (-s1 - (old_mean - shift) * s2) / count

    neg_loss = pair_mean(sums[0], sums[1], sums[2], neg_shift)
    self_loss = pair_mean(sums[3], sums[4], sums[5], self_shift)
    return neg_loss, self_loss


# ----------------------------------------------------------------------------
# JAX glue: F.grid_sample(padding_mode='border', align_corners=True) expressed
# as a (P_PAD, H*W) bilinear interpolation matrix (4 nonzeros per valid row),
# built gather-free with one-hot compares; applied inside the kernel.
# ----------------------------------------------------------------------------
def _build_interp_matrix(grid, h, w, hw_pad):
    n = grid.shape[0]
    x = grid[..., 0].reshape(n, P)
    y = grid[..., 1].reshape(n, P)
    ix = jnp.clip((x + 1.0) * 0.5 * (w - 1), 0.0, w - 1)   # border padding
    iy = jnp.clip((y + 1.0) * 0.5 * (h - 1), 0.0, h - 1)
    ix0 = jnp.floor(ix)
    iy0 = jnp.floor(iy)
    wx1 = ix - ix0
    wy1 = iy - iy0
    wx0 = 1.0 - wx1
    wy0 = 1.0 - wy1
    ix0i = jnp.clip(ix0, 0, w - 1).astype(jnp.int32)
    ix1i = jnp.clip(ix0 + 1, 0, w - 1).astype(jnp.int32)
    iy0i = jnp.clip(iy0, 0, h - 1).astype(jnp.int32)
    iy1i = jnp.clip(iy0 + 1, 0, h - 1).astype(jnp.int32)
    cols = jnp.arange(h * w, dtype=jnp.int32)

    def corner(iy_, ix_, wgt):
        idx = (iy_ * w + ix_)[..., None]                            # (N, P, 1)
        return (cols == idx).astype(jnp.float32) * wgt[..., None]   # (N, P, h*w)

    wmat = (corner(iy0i, ix0i, wy0 * wx0) + corner(iy0i, ix1i, wy0 * wx1)
            + corner(iy1i, ix0i, wy1 * wx0) + corner(iy1i, ix1i, wy1 * wx1))
    return jnp.pad(wmat, ((0, 0), (0, P_PAD - P), (0, hw_pad - h * w)))


# ----------------------------------------------------------------------------
# Forward pass (matches OriginalCorrelationLoss.forward with sim_matrix given)
# ----------------------------------------------------------------------------
def original_correlation_loss(orig_feats, orig_code, sim_matrix, key, *,
                              self_shift, self_weight, neg_shift, neg_weight,
                              tb_cap=8):
    n, cf, h, w = orig_feats.shape
    cc = orig_code.shape[1]
    k1, k2 = jax.random.split(key)
    # torch.rand(...) * 2 - 1
    # TODO(synk): torch RNG is not reproduced bit-exactly; same distribution via jax.random.
    coords1 = jax.random.uniform(k1, (n, S, S, 2), jnp.float32, -1.0, 1.0)
    coords2 = jax.random.uniform(k2, (n, S, S, 2), jnp.float32, -1.0, 1.0)
    # sample() permutes coords (0, 2, 1, 3) before grid_sample
    grid1 = jnp.transpose(coords1, (0, 2, 1, 3))
    grid2 = jnp.transpose(coords2, (0, 2, 1, 3))

    hw = h * w
    hw_pad = _round_up(hw, 128)
    cf_p = _round_up(cf, 8)
    cc_p = _round_up(cc, 8)

    w1 = _build_interp_matrix(grid1, h, w, hw_pad)     # (N, P_PAD, hw_pad)
    w2 = _build_interp_matrix(grid2, h, w, hw_pad)

    # sim_matrix provided (rand_neg=False): neg_indx = argmin over dim 0.
    neg_indx = jnp.argmin(sim_matrix, axis=0)

    def pack(x, cp):
        xf = x.reshape(n, x.shape[1], hw).astype(jnp.float32)
        return jnp.pad(xf, ((0, 0), (0, cp - x.shape[1]), (0, hw_pad - hw)))

    feats = pack(orig_feats, cf_p)                     # (N, cf_p, hw_pad)
    code = pack(orig_code, cc_p)                       # (N, cc_p, hw_pad)
    # One packed input: [f1 | c1 | neg_f | neg_c] along channels -> one DMA.
    maps = jnp.concatenate([feats, code, feats[neg_indx], code[neg_indx]],
                           axis=1)                     # (N, 2*(cf_p+cc_p), hw_pad)

    neg_loss, self_loss = _run_corr_kernel(
        maps, w1, w2, self_shift=self_shift, neg_shift=neg_shift,
        n_valid=n, cf=cf_p, cc=cc_p, tb_cap=tb_cap)
    return neg_weight * neg_loss + self_weight * self_loss


if __name__ == "__main__":
    key = jax.random.PRNGKey(0)
    kf, kc, ks, kr = jax.random.split(key, 4)

    # Deterministic small inputs: NCHW feats/code + a similarity matrix.
    N, CF, CC, H, W = 2, 32, 16, 16, 16
    orig_feats = jax.random.normal(kf, (N, CF, H, W), jnp.float32)
    orig_code = jax.random.normal(kc, (N, CC, H, W), jnp.float32)
    sim_matrix = jax.random.normal(ks, (N, N), jnp.float32)

    # Deterministic hyperparameters (the module has no learnable weights).
    loss = original_correlation_loss(
        orig_feats, orig_code, sim_matrix, kr,
        self_shift=0.18, self_weight=0.67,
        neg_shift=0.46, neg_weight=0.63,
    )
    loss = jax.block_until_ready(loss)
    assert bool(jnp.isfinite(loss))
    print("KERNEL_OK")
</pallas_src>

<mosaic_0001>
module attributes {stable_mosaic.version = 11 : i64} {
  func.func @_corr_loss_kernel(%arg0: i32, %arg1: memref<1x96x256xf32, #tpu.memory_space<vmem>>, %arg2: memref<1x128x256xf32, #tpu.memory_space<vmem>>, %arg3: memref<1x128x256xf32, #tpu.memory_space<vmem>>, %arg4: memref<1x8x128xf32, #tpu.memory_space<vmem>>) attributes {dimension_semantics = [#tpu.dimension_semantics<parallel>], iteration_bounds = array<i64: 2>, scalar_prefetch = 0 : i64, scratch_operands = 0 : i64, tpu.core_type = #tpu.core_type<tc>, window_params = [{transform_indices = @transform_0, window_bounds = array<i64: 1, 96, 256>}, {transform_indices = @transform_1, window_bounds = array<i64: 1, 128, 256>}, {transform_indices = @transform_2, window_bounds = array<i64: 1, 128, 256>}, {transform_indices = @transform_3, window_bounds = array<i64: 1, 8, 128>}]} {
    %cst = arith.constant 0.000000e+00 : f32
    %0 = vector.broadcast %cst : f32 to vector<1x128xf32>
    %cst_0 = arith.constant 0.000000e+00 : f32
    %1 = vector.broadcast %cst_0 : f32 to vector<1x128xf32>
    %cst_1 = arith.constant 0.000000e+00 : f32
    %2 = vector.broadcast %cst_1 : f32 to vector<1x128xf32>
    %cst_2 = arith.constant 0.000000e+00 : f32
    %3 = vector.broadcast %cst_2 : f32 to vector<1x128xf32>
    %cst_3 = arith.constant 0.000000e+00 : f32
    %4 = vector.broadcast %cst_3 : f32 to vector<1x128xf32>
    %cst_4 = arith.constant 0.000000e+00 : f32
    %5 = vector.broadcast %cst_4 : f32 to vector<1x128xf32>
    %c0 = arith.constant 0 : index
    %c0_5 = arith.constant 0 : index
    %c0_6 = arith.constant 0 : index
    %6 = vector.load %arg1[%c0, %c0_5, %c0_6] : memref<1x96x256xf32, #tpu.memory_space<vmem>>, vector<1x48x256xf32>
    %7 = vector.shape_cast %6 : vector<1x48x256xf32> to vector<48x256xf32>
    %c0_7 = arith.constant 0 : index
    %c48 = arith.constant 48 : index
    %c0_8 = arith.constant 0 : index
    %8 = vector.load %arg1[%c0_7, %c48, %c0_8] : memref<1x96x256xf32, #tpu.memory_space<vmem>>, vector<1x48x256xf32>
    %9 = vector.shape_cast %8 : vector<1x48x256xf32> to vector<48x256xf32>
    %c0_9 = arith.constant 0 : index
    %c0_10 = arith.constant 0 : index
    %c0_11 = arith.constant 0 : index
    %10 = vector.load %arg2[%c0_9, %c0_10, %c0_11] : memref<1x128x256xf32, #tpu.memory_space<vmem>>, vector<1x128x256xf32>
    %11 = vector.shape_cast %10 : vector<1x128x256xf32> to vector<128x256xf32>
    %c0_12 = arith.constant 0 : index
    %c0_13 = arith.constant 0 : index
    %c0_14 = arith.constant 0 : index
    %12 = vector.load %arg3[%c0_12, %c0_13, %c0_14] : memref<1x128x256xf32, #tpu.memory_space<vmem>>, vector<1x128x256xf32>
    %13 = vector.shape_cast %12 : vector<1x128x256xf32> to vector<128x256xf32>
    %cst_15 = arith.constant dense<0.000000e+00> : vector<48x128xf32>
    %14 = tpu.matmul %7, %11, %cst_15 {dimension_numbers = #tpu.dot_dimension_numbers<[1], [1], [0], [0], [0, 0, 1, 0], [], []>} : vector<48x256xf32>, vector<128x256xf32>, vector<48x128xf32> -> vector<48x128xf32>
    %cst_16 = arith.constant dense<0.000000e+00> : vector<48x128xf32>
    %15 = tpu.matmul %9, %13, %cst_16 {dimension_numbers = #tpu.dot_dimension_numbers<[1], [1], [0], [0], [0, 0, 1, 0], [], []>} : vector<48x256xf32>, vector<128x256xf32>, vector<48x128xf32> -> vector<48x128xf32>
    %16 = vector.extract_strided_slice %14 {offsets = [0, 0], sizes = [32, 128], strides = [1, 1]} : vector<48x128xf32> to vector<32x128xf32>
    %17 = arith.mulf %16, %16 : vector<32x128xf32>
    %cst_17 = arith.constant dense<0.000000e+00> : vector<128xf32>
    %18 = vector.multi_reduction <add>, %17, %cst_17 [0] : vector<32x128xf32> to vector<128xf32>
    %19 = vector.shape_cast %18 : vector<128xf32> to vector<1x128xf32>
    %cst_18 = arith.constant 9.99999968E-21 : f32
    %20 = vector.broadcast %cst_18 : f32 to vector<1x128xf32>
    %21 = arith.maximumf %19, %20 : vector<1x128xf32>
    %22 = math.rsqrt %21 : vector<1x128xf32>
    %23 = vector.broadcast %22 : vector<1x128xf32> to vector<32x128xf32>
    %24 = arith.mulf %16, %23 : vector<32x128xf32>
    %25 = vector.extract_strided_slice %14 {offsets = [32, 0], sizes = [16, 128], strides = [1, 1]} : vector<48x128xf32> to vector<16x128xf32>
    %26 = arith.mulf %25, %25 : vector<16x128xf32>
    %cst_19 = arith.constant dense<0.000000e+00> : vector<128xf32>
    %27 = vector.multi_reduction <add>, %26, %cst_19 [0] : vector<16x128xf32> to vector<128xf32>
    %28 = vector.shape_cast %27 : vector<128xf32> to vector<1x128xf32>
    %cst_20 = arith.constant 9.99999968E-21 : f32
    %29 = vector.broadcast %cst_20 : f32 to vector<1x128xf32>
    %30 = arith.maximumf %28, %29 : vector<1x128xf32>
    %31 = math.rsqrt %30 : vector<1x128xf32>
    %32 = vector.broadcast %31 : vector<1x128xf32> to vector<16x128xf32>
    %33 = arith.mulf %25, %32 : vector<16x128xf32>
    %34 = vector.extract_strided_slice %15 {offsets = [0, 0], sizes = [32, 128], strides = [1, 1]} : vector<48x128xf32> to vector<32x128xf32>
    %35 = arith.mulf %34, %34 : vector<32x128xf32>
    %cst_21 = arith.constant dense<0.000000e+00> : vector<128xf32>
    %36 = vector.multi_reduction <add>, %35, %cst_21 [0] : vector<32x128xf32> to vector<128xf32>
    %37 = vector.shape_cast %36 : vector<128xf32> to vector<1x128xf32>
    %cst_22 = arith.constant 9.99999968E-21 : f32
    %38 = vector.broadcast %cst_22 : f32 to vector<1x128xf32>
    %39 = arith.maximumf %37, %38 : vector<1x128xf32>
    %40 = math.rsqrt %39 : vector<1x128xf32>
    %41 = vector.broadcast %40 : vector<1x128xf32> to vector<32x128xf32>
    %42 = arith.mulf %34, %41 : vector<32x128xf32>
    %43 = vector.extract_strided_slice %15 {offsets = [32, 0], sizes = [16, 128], strides = [1, 1]} : vector<48x128xf32> to vector<16x128xf32>
    %44 = arith.mulf %43, %43 : vector<16x128xf32>
    %cst_23 = arith.constant dense<0.000000e+00> : vector<128xf32>
    %45 = vector.multi_reduction <add>, %44, %cst_23 [0] : vector<16x128xf32> to vector<128xf32>
    %46 = vector.shape_cast %45 : vector<128xf32> to vector<1x128xf32>
    %cst_24 = arith.constant 9.99999968E-21 : f32
    %47 = vector.broadcast %cst_24 : f32 to vector<1x128xf32>
    %48 = arith.maximumf %46, %47 : vector<1x128xf32>
    %49 = math.rsqrt %48 : vector<1x128xf32>
    %50 = vector.broadcast %49 : vector<1x128xf32> to vector<16x128xf32>
    %51 = arith.mulf %43, %50 : vector<16x128xf32>
    %cst_25 = arith.constant dense<0.000000e+00> : vector<32xf32>
    %52 = vector.multi_reduction <add>, %24, %cst_25 [1] : vector<32x128xf32> to vector<32xf32>
    %53 = vector.shape_cast %52 : vector<32xf32> to vector<32x1xf32>
    %cst_26 = arith.constant dense<0.000000e+00> : vector<32xf32>
    %54 = vector.multi_reduction <add>, %42, %cst_26 [1] : vector<32x128xf32> to vector<32xf32>
    %55 = vector.shape_cast %54 : vector<32xf32> to vector<32x1xf32>
    %56 = vector.broadcast %53 : vector<32x1xf32> to vector<32x128xf32>
    %57 = arith.mulf %42, %56 : vector<32x128xf32>
    %cst_27 = arith.constant dense<0.000000e+00> : vector<128xf32>
    %58 = vector.multi_reduction <add>, %57, %cst_27 [0] : vector<32x128xf32> to vector<128xf32>
    %59 = vector.shape_cast %58 : vector<128xf32> to vector<1x128xf32>
    %cst_28 = arith.constant dense<0.000000e+00> : vector<128x128xf32>
    %60 = tpu.matmul %33, %51, %cst_28 {dimension_numbers = #tpu.dot_dimension_numbers<[0], [0], [1], [1], [0, 1, 1, 1], [], []>} : vector<16x128xf32>, vector<16x128xf32>, vector<128x128xf32> -> vector<128x128xf32>
    %cst_29 = arith.constant 0.000000e+00 : f32
    %61 = vector.broadcast %cst_29 : f32 to vector<128x128xf32>
    %62 = arith.maximumf %60, %61 : vector<128x128xf32>
    %cst_30 = arith.constant dense<0.000000e+00> : vector<128xf32>
    %63 = vector.multi_reduction <add>, %62, %cst_30 [0] : vector<128x128xf32> to vector<128xf32>
    %64 = vector.shape_cast %63 : vector<128xf32> to vector<1x128xf32>
    %cst_31 = arith.constant 0.00826446246 : f32
    %65 = vector.broadcast %cst_31 : f32 to vector<32x1xf32>
    %66 = arith.mulf %55, %65 : vector<32x1xf32>
    %67 = vector.broadcast %66 : vector<32x1xf32> to vector<32x128xf32>
    %68 = arith.subf %42, %67 : vector<32x128xf32>
    %cst_32 = arith.constant dense<0.000000e+00> : vector<128x128xf32>
    %69 = tpu.matmul %24, %68, %cst_32 {dimension_numbers = #tpu.dot_dimension_numbers<[0], [0], [1], [1], [0, 1, 1, 1], [], []>} : vector<32x128xf32>, vector<32x128xf32>, vector<128x128xf32> -> vector<128x128xf32>
    %70 = arith.mulf %62, %69 : vector<128x128xf32>
    %cst_33 = arith.constant dense<0.000000e+00> : vector<128xf32>
    %71 = vector.multi_reduction <add>, %70, %cst_33 [0] : vector<128x128xf32> to vector<128xf32>
    %72 = vector.shape_cast %71 : vector<128xf32> to vector<1x128xf32>
    %cst_34 = arith.constant dense<0.000000e+00> : vector<32xf32>
    %73 = vector.multi_reduction <add>, %24, %cst_34 [1] : vector<32x128xf32> to vector<32xf32>
    %74 = vector.shape_cast %73 : vector<32xf32> to vector<32x1xf32>
    %cst_35 = arith.constant dense<0.000000e+00> : vector<32xf32>
    %75 = vector.multi_reduction <add>, %24, %cst_35 [1] : vector<32x128xf32> to vector<32xf32>
    %76 = vector.shape_cast %75 : vector<32xf32> to vector<32x1xf32>
    %77 = vector.broadcast %74 : vector<32x1xf32> to vector<32x128xf32>
    %78 = arith.mulf %24, %77 : vector<32x128xf32>
    %cst_36 = arith.constant dense<0.000000e+00> : vector<128xf32>
    %79 = vector.multi_reduction <add>, %78, %cst_36 [0] : vector<32x128xf32> to vector<128xf32>
    %80 = vector.shape_cast %79 : vector<128xf32> to vector<1x128xf32>
    %cst_37 = arith.constant dense<0.000000e+00> : vector<128x128xf32>
    %81 = tpu.matmul %33, %33, %cst_37 {dimension_numbers = #tpu.dot_dimension_numbers<[0], [0], [1], [1], [0, 1, 1, 1], [], []>} : vector<16x128xf32>, vector<16x128xf32>, vector<128x128xf32> -> vector<128x128xf32>
    %cst_38 = arith.constant 0.000000e+00 : f32
    %82 = vector.broadcast %cst_38 : f32 to vector<128x128xf32>
    %83 = arith.maximumf %81, %82 : vector<128x128xf32>
    %cst_39 = arith.constant dense<0.000000e+00> : vector<128xf32>
    %84 = vector.multi_reduction <add>, %83, %cst_39 [0] : vector<128x128xf32> to vector<128xf32>
    %85 = vector.shape_cast %84 : vector<128xf32> to vector<1x128xf32>
    %cst_40 = arith.constant 0.00826446246 : f32
    %86 = vector.broadcast %cst_40 : f32 to vector<32x1xf32>
    %87 = arith.mulf %76, %86 : vector<32x1xf32>
    %88 = vector.broadcast %87 : vector<32x1xf32> to vector<32x128xf32>
    %89 = arith.subf %24, %88 : vector<32x128xf32>
    %cst_41 = arith.constant dense<0.000000e+00> : vector<128x128xf32>
    %90 = tpu.matmul %24, %89, %cst_41 {dimension_numbers = #tpu.dot_dimension_numbers<[0], [0], [1], [1], [0, 1, 1, 1], [], []>} : vector<32x128xf32>, vector<32x128xf32>, vector<128x128xf32> -> vector<128x128xf32>
    %91 = arith.mulf %83, %90 : vector<128x128xf32>
    %cst_42 = arith.constant dense<0.000000e+00> : vector<128xf32>
    %92 = vector.multi_reduction <add>, %91, %cst_42 [0] : vector<128x128xf32> to vector<128xf32>
    %93 = vector.shape_cast %92 : vector<128xf32> to vector<1x128xf32>
    %94 = arith.addf %0, %72 : vector<1x128xf32>
    %95 = arith.addf %1, %64 : vector<1x128xf32>
    %96 = arith.addf %2, %59 : vector<1x128xf32>
    %97 = arith.addf %3, %93 : vector<1x128xf32>
    %98 = arith.addf %4, %85 : vector<1x128xf32>
    %99 = arith.addf %5, %80 : vector<1x128xf32>
    %cst_43 = arith.constant 0.000000e+00 : f32
    %100 = vector.broadcast %cst_43 : f32 to vector<2x128xf32>
    %101 = tpu.concatenate %94, %95, %96, %97, %98, %99, %100 in 0 : vector<1x128xf32>, vector<1x128xf32>, vector<1x128xf32>, vector<1x128xf32>, vector<1x128xf32>, vector<1x128xf32>, vector<2x128xf32> -> vector<8x128xf32>
    %c0_44 = arith.constant 0 : index
    %c0_45 = arith.constant 0 : index
    %c0_46 = arith.constant 0 : index
    %102 = vector.load %arg4[%c0_44, %c0_45, %c0_46] : memref<1x8x128xf32, #tpu.memory_space<vmem>>, vector<1x8x128xf32>
    %103 = vector.shape_cast %102 : vector<1x8x128xf32> to vector<8x128xf32>
    %104 = vector.shape_cast %101 : vector<8x128xf32> to vector<1x8x128xf32>
    tpu.vector_store %arg4[%c0_44, %c0_45, %c0_46], %104 {strides = array<i32>} : memref<1x8x128xf32, #tpu.memory_space<vmem>>, vector<1x8x128xf32>,
    return
  }
  func.func @transform_0(%arg0: i32) -> (i32, i32, i32) {
    %c0_i32 = arith.constant 0 : i32
    %c0_i32_0 = arith.constant 0 : i32
    %c0_i32_1 = arith.constant 0 : i32
    return %arg0, %c0_i32, %c0_i32_0 : i32, i32, i32
  }
  func.func @transform_1(%arg0: i32) -> (i32, i32, i32) {
    %c0_i32 = arith.constant 0 : i32
    %c0_i32_0 = arith.constant 0 : i32
    %c0_i32_1 = arith.constant 0 : i32
    return %arg0, %c0_i32, %c0_i32_0 : i32, i32, i32
  }
  func.func @transform_2(%arg0: i32) -> (i32, i32, i32) {
    %c0_i32 = arith.constant 0 : i32
    %c0_i32_0 = arith.constant 0 : i32
    %c0_i32_1 = arith.constant 0 : i32
    return %arg0, %c0_i32, %c0_i32_0 : i32, i32, i32
  }
  func.func @transform_3(%arg0: i32) -> (i32, i32, i32) {
    %c0_i32 = arith.constant 0 : i32
    %c0_i32_0 = arith.constant 0 : i32
    %c0_i32_1 = arith.constant 0 : i32
    return %arg0, %c0_i32, %c0_i32_0 : i32, i32, i32
  }
}

</mosaic_0001>

<bundles_post_ra>
// kernel: tpu_custom_call.1
= control target key start
LH: loop header
LB: loop body
LE: loop exit
PB: predicated region body
PF: predicated region fallthrough
CT: control target
= control target key end

     0   :  { %s2828_s0 = inlined_call_operand.hbm [shape: f32[2,96,256], index: 0, kind: input, shape index: {}]   ;;  %s2829_s1 = inlined_call_operand.hbm [shape: f32[2,128,256], index: 1, kind: input, shape index: {}]   ;;  %s2830_s2 = inlined_call_operand.hbm [shape: f32[2,128,256], index: 2, kind: input, shape index: {}]   ;;  %s2831_s3 = inlined_call_operand.hbm [shape: f32[2,8,128], index: 3, kind: output, shape index: {}]  }
   0x1   :  { %2838 = sst [smem:[#allocation12_spill]] %s2829_s1 }
   0x2   :  { %8 = vsyncpa [#allocation3], 0 }
   0x3   :  { %10 = vsyncpa [#allocation3 + $0x1], 0 }
   0x4   :  { %11 = vsyncpa [#allocation6], 0 }
   0x5   :  { %13 = vsyncpa [#allocation6 + $0x1], 0 }
   0x6   :  { %14 = vsyncpa [#allocation4], 0 }
   0x7   :  { %16 = vsyncpa [#allocation4 + $0x1], 0  ;;  %s2328_s12 = smov 0   ;;  %s2330_s13 = smov 0  }
   0x8   :  { %s2332_s14 = smov 0   ;;  %s2334_s15 = smov 0  }
   0x9 LB: > { %s2349_s16 = sadd.s32 4294967295, %s2300_s15   ;;  %s1702_s17 = sadd.s32 4294967294, %s2300_s15   ;;  %s2300_s15 = sphi %s2334_s15, %s2856_s15   ;;  %s2296_s14 = sphi %s2332_s14, %s2855_s14   ;;  %s2292_s13 = sphi %s2330_s13, %s2854_s13   ;;  %s2288_s12 = sphi %s2328_s12, %s2853_s12  }
   0xa   : > { %s2353_s18 = sadd.s32 1, %s2300_s15   ;;  %s29_s19 = sadd.s32 1, %s2296_s14 }
   0xb   : > { %s26_s20 = ssub.s32 %s2300_s15, %s2353_s18  ;;  %p36_p0 = scmp.ne.s32.totalorder %s2296_s14, %s2292_s13 }
   0xc   : > { %p27_p1 = scmp.eq.s32.totalorder %s26_s20, 0  ;;  %p37_p2 = scmp.eq.s32.totalorder %s2300_s15, 0 }
   0xd   : > { %p42_p3 = scmp.ne.s32.totalorder %s2292_s13, %s2288_s12  ;;  %p43_p4 = scmp.eq.s32.totalorder %s2349_s16, 0 }
   0xe   : > { %s2365_s21 = scalar_select %p27_p1, %s2296_s14, %s29_s19  }
   0xf   : > { %p38_p5 = por %p37_p2, %p36_p0  ;;  %p2367_p6 = por %p43_p4, %p42_p3 }
  0x10   : > { %p118_p7 = scmp.eq.s32.totalorder %s2349_s16, 1  ;;  %p124_p8 = scmp.eq.s32.totalorder %s1702_s17, 1 }
  0x11   : > { %s2839_s22 = scalar_select %p2367_p6, 1, 0 }
  0x12   : > { %p2095_p10 = scmp.lt.s32.totalorder %s2300_s15, 2  ;;  %p2374_p11 = por %p118_p7, %p36_p0 }
  0x13   : > { %p2378_p12 = por %p124_p8, %p42_p3  ;;  %s2383_s25 = sand.u32 1, %s2296_s14  }
  0x14   : > { %s2840_s23 = scalar_select %p2374_p11, 1, 0 }
  0x15   : > { %s2841_s24 = scalar_select %p2378_p12, 1, 0 }
  0x16   : > { %p2385_p13 = pnand %p2095_p10, %p38_p5  ;;  %s165_s27 = sand.u32 1, %s2300_s15  }
  0x17   : > { %s1706_s28 = sshll.u32 %s2383_s25, 8  ;;  %s1784_s29 = sshll.u32 %s2300_s15, 12 }
  0x18   : > { %s2843_s1 = sld [smem:[#allocation12_spill]]  ;;  %s169_s6 = scalar_lea.vmem [#allocation5], %s1706_s28 }
  0x19   : > { %s176_s7 = sshll.u32 %s169_s6, 4  ;;  %s2403_s8 = scalar_lea.sflag [#allocation6], %s165_s27  ;;  %s2401_s7 = int_to_ptr.vmem [resolvable:$true] %s176_s7 }
  0x1a   : > { %p2409_p1 = pneg %p2385_p13 }
  0x1e   : > { %s2397_s5 = scalar_lea.hbm %s2843_s1, %s1784_s29  ;;  %s2145_s19 = scalar_lea.hbm %s2843_s1, 8192 }
  0x1f   : > { %s2140_s9 = scalar_lea.hbm %s2397_s5, 4096  ;;  %p2146_p4 = scmp.lt.u32.totalorder %s2397_s5, %s2843_s1 }
  0x20   : > { %p2141_p0 = scmp.ne.s32.totalorder %s2397_s5, %s2140_s9  ;;  %p2147_p5 = scmp.lt.u32.totalorder %s2145_s19, %s2140_s9 }
  0x21   : > { %p2149_p8 = scmp.lt.u32.totalorder %s2140_s9, %s2397_s5 }
  0x22   : > { %p2143_p2 = pnand %p2409_p1, %p2141_p0  ;;  %p2148_p7 = por %p2147_p5, %p2146_p4 }
  0x24   : > { %p2144_p3 = pneg %p2143_p2  ;;  %p2150_p10 = por %p2149_p8, %p2148_p7 }
  0x26   : > { %p2151_p9 = pnand %p2150_p10, %p2144_p3 }
  0x28   : > { %2154 = shalt.err (!%p2151_p9)
}
  0x29   : > { %s2155_s27 = scalar_lea.vmem %s2401_s7, 4096  ;;  %s2302_s4 = smov [#allocation5]  }
  0x2a   : > { %p2156_p0 = scmp.ne.s32.totalorder %s2401_s7, %s2155_s27  ;;  %s2160_s6 = sshll.u32 %s2302_s4, 4  ;;  %s2161_s6 = int_to_ptr.vmem [resolvable:$false] %s2160_s6 }
  0x2b   : > { %s2162_s11 = scalar_lea.vmem %s2161_s6, 8192  ;;  %p2163_p11 = scmp.lt.s32.totalorder %s2401_s7, %s2161_s6 }
  0x2c   : > { %p2158_p2 = pnand %p2156_p0, %p2409_p1  ;;  %p2164_p6 = scmp.lt.s32.totalorder %s2162_s11, %s2155_s27 }
  0x2e   : > { %p2159_p12 = pneg %p2158_p2  ;;  %p2165_p4 = por %p2164_p6, %p2163_p11 }
  0x30   : > { %p2166_p5 = pnand %p2165_p4, %p2159_p12 }
  0x32   : > { %2169 = shalt.err (!%p2166_p5)
}
  0x33   : > { %s2834_s9 = smov 256   ;;  %s2836_s17 = smov 16  }
  0x34   : > { %2087 = dma.hbm_to_vmem [thread:$0]  (!%p2385_p13), %s2397_s5, 4096, %s2401_s7, %s2403_s8, %s2834_s9, %s2834_s9, %s2836_s17  }
  0x35   : > { %s190_s19 = scalar_lea.vmem [#allocation7], %s1706_s28  ;;  %p1712_p6 = scmp.ge.s32.totalorder %s2300_s15, 1 }
  0x36   : > { %s197_s20 = sshll.u32 %s190_s19, 4  ;;  %s2444_s4 = scalar_lea.hbm %s2830_s2, %s1784_s29  ;;  %s2447_s20 = int_to_ptr.vmem [resolvable:$true] %s197_s20 }
  0x37   : > { %p205_p9 = scmp.lt.s32.totalorder %s2300_s15, 3  ;;  %s2070_s6 = smul.u32 192, %s2383_s25 }
  0x38   : > { %s2071_s5 = smul.u32 3072, %s2300_s15  ;;  %s145_s27 = scalar_lea.sflag [#allocation3], %s2383_s25 }
  0x39   : > { %p2450_p11 = pnand %p1712_p6, %p205_p9  ;;  %s148_s29 = scalar_lea.vmem [#allocation2], %s2070_s6 }
  0x3a   : > { %s2458_s19 = scalar_lea.hbm %s2828_s0, %s2071_s5  ;;  %s155_s30 = sshll.u32 %s148_s29, 4  ;;  %s2460_s30 = int_to_ptr.vmem [resolvable:$true] %s155_s30 }
  0x3b   : > { %s2845_s11 = scalar_select %p2450_p11, 1, 0 }
  0x3c   : > { %s2170_s9 = scalar_lea.hbm %s2458_s19, 3072  ;;  %s2175_s7 = scalar_lea.hbm %s2828_s0, 6144 }
  0x3d   : > { %p2171_p12 = scmp.ne.s32.totalorder %s2458_s19, %s2170_s9  ;;  %p2176_p8 = scmp.lt.u32.totalorder %s2458_s19, %s2828_s0 }
  0x3e   : > { %p2177_p10 = scmp.lt.u32.totalorder %s2175_s7, %s2170_s9  ;;  %p2179_p2 = scmp.lt.u32.totalorder %s2170_s9, %s2458_s19 }
  0x3f   : > { %p2173_p3 = pnand %p2171_p12, %p2409_p1 }
  0x40   : > { %p2178_p0 = por %p2177_p10, %p2176_p8 }
  0x41   : > { %p2174_p7 = pneg %p2173_p3 }
  0x42   : > { %p2180_p4 = por %p2179_p2, %p2178_p0 }
  0x44   : > { %p2181_p5 = pnand %p2180_p4, %p2174_p7 }
  0x46   : > { %2184 = shalt.err (!%p2181_p5)
}
  0x47   : > { %s2185_s6 = scalar_lea.vmem %s2460_s30, 3072  ;;  %s2305_s1 = smov [#allocation2]  }
  0x48   : > { %p2186_p6 = scmp.ne.s32.totalorder %s2460_s30, %s2185_s6  ;;  %s2190_s17 = sshll.u32 %s2305_s1, 4  ;;  %s2191_s17 = int_to_ptr.vmem [resolvable:$false] %s2190_s17 }
  0x49   : > { %s2192_s29 = scalar_lea.vmem %s2191_s17, 6144  ;;  %p2193_p3 = scmp.lt.s32.totalorder %s2460_s30, %s2191_s17 }
  0x4a   : > { %p2188_p9 = pnand %p2186_p6, %p2409_p1  ;;  %p2194_p11 = scmp.lt.s32.totalorder %s2192_s29, %s2185_s6 }
  0x4c   : > { %p2189_p12 = pneg %p2188_p9  ;;  %p2195_p8 = por %p2194_p11, %p2193_p3 }
  0x4e   : > { %p2196_p10 = pnand %p2195_p8, %p2189_p12 }
  0x50   : > { %2199 = shalt.err (!%p2196_p10)
}
  0x51   : > { %s2846_s9 = smov 16   ;;  %s2847_s7 = smov 256  }
  0x52   : > { %2084 = dma.hbm_to_vmem [thread:$0]  (!%p2385_p13), %s2458_s19, 3072, %s2460_s30, %s145_s27, %s2847_s7, %s2847_s7, %s2846_s9  }
  0x53   : > { %s2200_s5 = scalar_lea.hbm %s2444_s4, 4096  ;;  %s2205_s1 = scalar_lea.hbm %s2830_s2, 8192 }
  0x54   : > { %p2201_p7 = scmp.ne.s32.totalorder %s2444_s4, %s2200_s5  ;;  %p2206_p2 = scmp.lt.u32.totalorder %s2444_s4, %s2830_s2 }
  0x55   : > { %p2207_p4 = scmp.lt.u32.totalorder %s2205_s1, %s2200_s5  ;;  %p2209_p6 = scmp.lt.u32.totalorder %s2200_s5, %s2444_s4 }
  0x56   : > { %p2203_p11 = pnand %p2201_p7, %p2409_p1 }
  0x57   : > { %p2208_p5 = por %p2207_p4, %p2206_p2 }
  0x58   : > { %p2204_p0 = pneg %p2203_p11 }
  0x59   : > { %p2210_p9 = por %p2209_p6, %p2208_p5 }
  0x5b   : > { %p2211_p12 = pnand %p2210_p9, %p2204_p0 }
  0x5d   : > { %2214 = shalt.err (!%p2211_p12)
}
  0x5e   : > { %s2215_s25 = scalar_lea.vmem %s2447_s20, 4096  ;;  %s2306_s19 = smov [#allocation7]  }
  0x5f   : > { %p2216_p3 = scmp.ne.s32.totalorder %s2447_s20, %s2215_s25  ;;  %s2220_s30 = sshll.u32 %s2306_s19, 4  ;;  %s2221_s30 = int_to_ptr.vmem [resolvable:$false] %s2220_s30 }
  0x60   : > { %s2222_s27 = scalar_lea.vmem %s2221_s30, 8192  ;;  %p2223_p7 = scmp.lt.s32.totalorder %s2447_s20, %s2221_s30 }
  0x61   : > { %p2218_p8 = pnand %p2216_p3, %p2409_p1  ;;  %p2224_p11 = scmp.lt.s32.totalorder %s2222_s27, %s2215_s25 }
  0x63   : > { %p2219_p10 = pneg %p2218_p8  ;;  %p2225_p2 = por %p2224_p11, %p2223_p7 }
  0x65   : > { %p2226_p4 = pnand %p2225_p2, %p2219_p10 }
  0x67   : > { %2229 = shalt.err (!%p2226_p4)
}
  0x68   : > { %2090 = dma.hbm_to_vmem [thread:$0]  (!%p2385_p13), %s2444_s4, 4096, %s2447_s20, %s2403_s8, %s2847_s7, %s2847_s7, %s2846_s9  }
  0x69   : > { %p2848_p1 = scmp.ne.s32.totalorder %s2845_s11, 0 }
  0x6a   : > { %s2517_s10 = sand.u32 (!%p2848_p1), 1, %s2292_s13   ;;  %p2849_p0 = scmp.ne.s32.totalorder (!%p2848_p1), %s2839_s22, 0 }
  0x6b   : > { %209 = sbr.rel (%p2848_p1) target bundleno = 975 (0x3cf), region = 32  ;;  %s212_s28 = scalar_lea.sflag (!%p2848_p1), [#allocation3], %s2517_s10 }
  0x6c   : > { %s2072_s5 = smul.u32 (!%p2848_p1), 192, %s2517_s10 }
  0x6e   : > { %s2521_s6 = scalar_lea.vmem (!%p2848_p1), [#allocation2], %s2072_s5 }
  0x72   : > { %2275 = dma.done.wait (%p2849_p0), %s212_s28, 3072  }
  0x73   : > { %2277 = vsyncadd (%p2849_p0), %s212_s28, 4294964224  ;;  %s220_s26 = sand.u32 1, %s2349_s16   ;;  %s1713_s8 = sshll.u32 %s2517_s10, 8 }
  0x74   : > { %s221_s20 = scalar_lea.sflag [#allocation6], %s220_s26  ;;  %s2529_s4 = scalar_lea.vmem [#allocation5], %s1713_s8 }
  0x75   : > { %2279 = dma.done.wait (%p2849_p0), %s221_s20, 8192  }
  0x76   : > { %2281 = vsyncadd (%p2849_p0), %s221_s20, 4294959104  ;;  %v291_v0 = vld [vmem:[%s2529_s4 + $0x8] sm:$0xff]  ;;  %v293_v1 = vld [vmem:[%s2529_s4 + $0x18] sm:$0xff]  ;;  %s2537_s11 = scalar_lea.vmem [#allocation7], %s1713_s8  ;;  %vm669_vm0 = vcmask 130048   ;;  %vm940_vm1 = vcmask 261120  }
  0x77   : > { %v323_v2 = vld [vmem:[%s2537_s11 + $0x8] sm:$0xff]  ;;  %v1982_v3 = vpack.c.bf16 %v293_v1, %v291_v0  ;;  %v325_v4 = vld [vmem:[%s2537_s11 + $0x18] sm:$0xff]  ;;  %v290_v5 = vld [vmem:[%s2529_s4] sm:$0xff]  ;;  %vm1562_vm2 = vcmask 1040384   ;;  %vm1564_vm3 = vcmask 1041408   ;;  %s1715_s22 = sshll.u32 %s2517_s10, 3 }
  0x78   : > { %v292_v6 = vld [vmem:[%s2529_s4 + $0x10] sm:$0xff]  ;;  %v2014_v7 = vpack.c.bf16 %v325_v4, %v323_v2  ;;  %v322_v9 = vld [vmem:[%s2537_s11] sm:$0xff]  ;;  %v295_v11 = vld [vmem:[%s2529_s4 + $0x28] sm:$0xff]  ;;  %vm1566_vm4 = vcmask 1042432   ;;  %vm1568_vm5 = vcmask 1043456   ;;  %vm1570_vm6 = vcmask 1044480  }
  0x79   : > { %v1984_v8 = vpack.c.bf16 %v292_v6, %v290_v5  ;;  %v324_v10 = vld [vmem:[%s2537_s11 + $0x10] sm:$0xff]  ;;  %1983 = vmatprep.subr.bf16.mxu0 %v1982_v3  ;;  %v297_v13 = vld [vmem:[%s2529_s4 + $0x38] sm:$0xff]  ;;  %v327_v14 = vld [vmem:[%s2537_s11 + $0x28] sm:$0xff]  ;;  %s1781_s9 = sshll.u32 %s2349_s16, 7  ;;  %s265_s7 = scalar_lea.vmem [#allocation8], %s1715_s22  ;;  %vm1572_vm7 = vcmask 1045504  }
  0x7a   : > { %v2016_v12 = vpack.c.bf16 %v324_v10, %v322_v9  ;;  %v329_v15 = vld [vmem:[%s2537_s11 + $0x38] sm:$0xff]  ;;  %2015 = vmatprep.subr.bf16.mxu1 %v2014_v7  ;;  %v1986_v16 = vpack.c.bf16 %v297_v13, %v295_v11  ;;  %v294_v18 = vld [vmem:[%s2529_s4 + $0x20] sm:$0xff]  ;;  %v296_v19 = vld [vmem:[%s2529_s4 + $0x30] sm:$0xff]  ;;  %s1589_s1 = sshll.u32 %s265_s7, 4  ;;  %s2784_s25 = scalar_lea.hbm %s2831_s3, %s1781_s9  ;;  %s2786_s1 = int_to_ptr.vmem [resolvable:$true] %s1589_s1 }
  0x7b   : > { %1985 = vmatpush1.bf16.xpose.msra.mxu0 %v1984_v8  ;;  %v2018_v17 = vpack.c.bf16 %v329_v15, %v327_v14  ;;  %v326_v20 = vld [vmem:[%s2537_s11 + $0x20] sm:$0xff]  ;;  %v328_v21 = vld [vmem:[%s2537_s11 + $0x30] sm:$0xff]  ;;  %v299_v22 = vld [vmem:[%s2529_s4 + $0x48] sm:$0xff]  ;;  %v1988_v26 = vpack.c.bf16 %v296_v19, %v294_v18  ;;  %s1576_s16 = scalar_lea.sflag [#allocation4], %s2517_s10  ;;  %s2230_s19 = scalar_lea.vmem %s2786_s1, 128 }
  0x7c   : > { %2017 = vmatpush1.bf16.xpose.msra.mxu1 %v2016_v12  ;;  %1987 = vmatprep.subr.bf16.mxu0 %v1986_v16  ;;  %v301_v23 = vld [vmem:[%s2529_s4 + $0x58] sm:$0xff]  ;;  %v331_v24 = vld [vmem:[%s2537_s11 + $0x48] sm:$0xff]  ;;  %v2020_v27 = vpack.c.bf16 %v328_v21, %v326_v20  ;;  %v298_v30 = vld [vmem:[%s2529_s4 + $0x40] sm:$0xff]  ;;  %p2231_p13 = scmp.ne.s32.totalorder %s2786_s1, %s2230_s19  ;;  %p2850_p5 = scmp.ne.s32.totalorder %s2840_s23, 0 }
  0x7d   : > { %2019 = vmatprep.subr.bf16.mxu1 %v2018_v17  ;;  %v333_v25 = vld [vmem:[%s2537_s11 + $0x58] sm:$0xff]  ;;  %v1990_v28 = vpack.c.bf16 %v301_v23, %v299_v22  ;;  %v300_v31 = vld [vmem:[%s2529_s4 + $0x50] sm:$0xff]  ;;  %v330_v32 = vld [vmem:[%s2537_s11 + $0x40] sm:$0xff]  ;;  %s2307_s30 = smov [#allocation8]  }
  0x7e   : > { %v2022_v29 = vpack.c.bf16 %v333_v25, %v331_v24  ;;  %v332_v33 = vld [vmem:[%s2537_s11 + $0x50] sm:$0xff]  ;;  %v303_v34 = vld [vmem:[%s2529_s4 + $0x68] sm:$0xff]  ;;  %v305_v35 = vld [vmem:[%s2529_s4 + $0x78] sm:$0xff]  ;;  %v1992_v38 = vpack.c.bf16 %v300_v31, %v298_v30  ;;  %p2232_p6 = pnand %p2231_p13, %p2850_p5  ;;  %s2234_s27 = sshll.u32 %s2307_s30, 4  ;;  %s2235_s27 = int_to_ptr.vmem [resolvable:$false] %s2234_s27 }
  0x7f   : > { %v335_v36 = vld [vmem:[%s2537_s11 + $0x68] sm:$0xff]  ;;  %v337_v37 = vld [vmem:[%s2537_s11 + $0x78] sm:$0xff]  ;;  %v2024_v39 = vpack.c.bf16 %v332_v33, %v330_v32  ;;  %v1994_v40 = vpack.c.bf16 %v305_v35, %v303_v34  ;;  %v302_v42 = vld [vmem:[%s2529_s4 + $0x60] sm:$0xff]  ;;  %s2236_s5 = scalar_lea.vmem %s2235_s27, 256  ;;  %p2237_p12 = scmp.lt.s32.totalorder %s2786_s1, %s2235_s27 }
  0x80   : > { %v2026_v41 = vpack.c.bf16 %v337_v37, %v335_v36  ;;  %v304_v43 = vld [vmem:[%s2529_s4 + $0x70] sm:$0xff]  ;;  %v334_v44 = vld [vmem:[%s2537_s11 + $0x60] sm:$0xff]  ;;  %v267_v45 = vld [vmem:[%s2521_s6 + $0x8] sm:$0xff]  ;;  %p2233_p9 = pneg %p2232_p6  ;;  %p2238_p3 = scmp.lt.s32.totalorder %s2236_s5, %s2230_s19 }
  0x81   : > { %v279_v46 = vld [vmem:[%s2521_s6 + $0x68] sm:$0xff]  ;;  %v336_v47 = vld [vmem:[%s2537_s11 + $0x70] sm:$0xff]  ;;  %v309_v49 = vld [vmem:[%s2529_s4 + $0x98] sm:$0xff]  ;;  %418 = vmatprep.mubr.f32.mxu0 %v267_v45  ;;  %v1996_v52 = vpack.c.bf16 %v304_v43, %v302_v42 }
  0x82   : > { %v307_v48 = vld [vmem:[%s2529_s4 + $0x88] sm:$0xff]  ;;  %v341_v51 = vld [vmem:[%s2537_s11 + $0x98] sm:$0xff]  ;;  %513 = vmatprep.mubr.f32.mxu1 %v279_v46  ;;  %v2028_v53 = vpack.c.bf16 %v336_v47, %v334_v44  ;;  %v306_v56 = vld [vmem:[%s2529_s4 + $0x80] sm:$0xff]  ;;  %p2239_p8 = por %p2238_p3, %p2237_p12 }
  0x83   : > { %1989 = vmatpush1.bf16.xpose.msra.mxu0 %v1988_v26  ;;  %v339_v50 = vld [vmem:[%s2537_s11 + $0x88] sm:$0xff]  ;;  %v1998_v54 = vpack.c.bf16 %v309_v49, %v307_v48  ;;  %v308_v57 = vld [vmem:[%s2529_s4 + $0x90] sm:$0xff]  ;;  %v338_v58 = vld [vmem:[%s2537_s11 + $0x80] sm:$0xff] }
  0x84   : > { %2021 = vmatpush1.bf16.xpose.msra.mxu1 %v2020_v27  ;;  %1991 = vmatprep.subr.bf16.mxu0 %v1990_v28  ;;  %v2030_v55 = vpack.c.bf16 %v341_v51, %v339_v50  ;;  %v340_v59 = vld [vmem:[%s2537_s11 + $0x90] sm:$0xff]  ;;  %v311_v60 = vld [vmem:[%s2529_s4 + $0xa8] sm:$0xff]  ;;  %v313_v61 = vld [vmem:[%s2529_s4 + $0xb8] sm:$0xff]  ;;  %v2000_v0 = vpack.c.bf16 %v308_v57, %v306_v56  ;;  %p2240_p10 = pnand %p2239_p8, %p2233_p9 }
  0x85   : > { %2023 = vmatprep.subr.bf16.mxu1 %v2022_v29  ;;  %v343_v62 = vld [vmem:[%s2537_s11 + $0xa8] sm:$0xff]  ;;  %v345_v63 = vld [vmem:[%s2537_s11 + $0xb8] sm:$0xff]  ;;  %v2032_v1 = vpack.c.bf16 %v340_v59, %v338_v58  ;;  %v2002_v2 = vpack.c.bf16 %v313_v61, %v311_v60  ;;  %v310_v4 = vld [vmem:[%s2529_s4 + $0xa0] sm:$0xff] }
  0x86   : > { %v2034_v3 = vpack.c.bf16 %v345_v63, %v343_v62  ;;  %v312_v5 = vld [vmem:[%s2529_s4 + $0xb0] sm:$0xff]  ;;  %v342_v6 = vld [vmem:[%s2537_s11 + $0xa0] sm:$0xff]  ;;  %v315_v8 = vld [vmem:[%s2529_s4 + $0xc8] sm:$0xff] }
  0x87   : > { %v344_v7 = vld [vmem:[%s2537_s11 + $0xb0] sm:$0xff]  ;;  %v317_v9 = vld [vmem:[%s2529_s4 + $0xd8] sm:$0xff]  ;;  %v347_v10 = vld [vmem:[%s2537_s11 + $0xc8] sm:$0xff]  ;;  %v2004_v12 = vpack.c.bf16 %v312_v5, %v310_v4 }
  0x88   : > { %v349_v11 = vld [vmem:[%s2537_s11 + $0xd8] sm:$0xff]  ;;  %v2036_v13 = vpack.c.bf16 %v344_v7, %v342_v6  ;;  %v2006_v14 = vpack.c.bf16 %v317_v9, %v315_v8  ;;  %v314_v16 = vld [vmem:[%s2529_s4 + $0xc0] sm:$0xff]  ;;  %v316_v17 = vld [vmem:[%s2529_s4 + $0xd0] sm:$0xff] }
  0x89   : > { %v2038_v15 = vpack.c.bf16 %v349_v11, %v347_v10  ;;  %v346_v18 = vld [vmem:[%s2537_s11 + $0xc0] sm:$0xff]  ;;  %v348_v19 = vld [vmem:[%s2537_s11 + $0xd0] sm:$0xff]  ;;  %v319_v20 = vld [vmem:[%s2529_s4 + $0xe8] sm:$0xff]  ;;  %v2008_v24 = vpack.c.bf16 %v316_v17, %v314_v16 }
  0x8a   : > { %v321_v21 = vld [vmem:[%s2529_s4 + $0xf8] sm:$0xff]  ;;  %v351_v22 = vld [vmem:[%s2537_s11 + $0xe8] sm:$0xff]  ;;  %v2040_v25 = vpack.c.bf16 %v348_v19, %v346_v18  ;;  %v318_v28 = vld [vmem:[%s2529_s4 + $0xe0] sm:$0xff] }
  0x8b   : > { %1993 = vmatpush1.bf16.xpose.msra.mxu0 %v1992_v38  ;;  %v353_v23 = vld [vmem:[%s2537_s11 + $0xf8] sm:$0xff]  ;;  %v2010_v26 = vpack.c.bf16 %v321_v21, %v319_v20  ;;  %v320_v29 = vld [vmem:[%s2529_s4 + $0xf0] sm:$0xff]  ;;  %v350_v30 = vld [vmem:[%s2537_s11 + $0xe0] sm:$0xff] }
  0x8c   : > { %2025 = vmatpush1.bf16.xpose.msra.mxu1 %v2024_v39  ;;  %1995 = vmatprep.subr.bf16.mxu0 %v1994_v40  ;;  %v2042_v27 = vpack.c.bf16 %v353_v23, %v351_v22  ;;  %v352_v31 = vld [vmem:[%s2537_s11 + $0xf0] sm:$0xff]  ;;  %v2012_v32 = vpack.c.bf16 %v320_v29, %v318_v28  ;;  %v266_v34 = vld [vmem:[%s2521_s6] sm:$0xff]  ;;  %v269_v36 = vld [vmem:[%s2521_s6 + $0x18] sm:$0xff] }
  0x8d   : > { %2027 = vmatprep.subr.bf16.mxu1 %v2026_v41  ;;  %v2044_v33 = vpack.c.bf16 %v352_v31, %v350_v30  ;;  %v278_v35 = vld [vmem:[%s2521_s6 + $0x60] sm:$0xff]  ;;  %v281_v37 = vld [vmem:[%s2521_s6 + $0x78] sm:$0xff]  ;;  %v268_v38 = vld [vmem:[%s2521_s6 + $0x10] sm:$0xff] }
  0x8e   : > { %v280_v39 = vld [vmem:[%s2521_s6 + $0x70] sm:$0xff]  ;;  %v271_v40 = vld [vmem:[%s2521_s6 + $0x28] sm:$0xff]  ;;  %v270_v42 = vld [vmem:[%s2521_s6 + $0x20] sm:$0xff] }
  0x8f   : > { %v283_v41 = vld [vmem:[%s2521_s6 + $0x88] sm:$0xff]  ;;  %v282_v43 = vld [vmem:[%s2521_s6 + $0x80] sm:$0xff]  ;;  %v273_v44 = vld [vmem:[%s2521_s6 + $0x38] sm:$0xff] }
  0x90   : > { %v285_v45 = vld [vmem:[%s2521_s6 + $0x98] sm:$0xff]  ;;  %v272_v46 = vld [vmem:[%s2521_s6 + $0x30] sm:$0xff]  ;;  %v275_v48 = vld [vmem:[%s2521_s6 + $0x48] sm:$0xff] }
  0x91   : > { %v284_v47 = vld [vmem:[%s2521_s6 + $0x90] sm:$0xff]  ;;  %v287_v49 = vld [vmem:[%s2521_s6 + $0xa8] sm:$0xff]  ;;  %v274_v50 = vld [vmem:[%s2521_s6 + $0x40] sm:$0xff] }
  0x92   : > { %v286_v51 = vld [vmem:[%s2521_s6 + $0xa0] sm:$0xff] }
  0x93   : > { %1997 = vmatpush1.bf16.xpose.msra.mxu0 %v1996_v52  ;;  %v277_v52 = vld [vmem:[%s2521_s6 + $0x58] sm:$0xff] }
  0x94   : > { %2029 = vmatpush1.bf16.xpose.msra.mxu1 %v2028_v53  ;;  %1999 = vmatprep.subr.bf16.mxu0 %v1998_v54  ;;  %v289_v53 = vld [vmem:[%s2521_s6 + $0xb8] sm:$0xff]  ;;  %v276_v54 = vld [vmem:[%s2521_s6 + $0x50] sm:$0xff] }
  0x95   : > { %2031 = vmatprep.subr.bf16.mxu1 %v2030_v55  ;;  %v288_v55 = vld [vmem:[%s2521_s6 + $0xb0] sm:$0xff] }
  0x9b   : > { %2001 = vmatpush1.bf16.xpose.msra.mxu0 %v2000_v0 }
  0x9c   : > { %2033 = vmatpush1.bf16.xpose.msra.mxu1 %v2032_v1  ;;  %2003 = vmatprep.subr.bf16.mxu0 %v2002_v2 }
  0x9d   : > { %2035 = vmatprep.subr.bf16.mxu1 %v2034_v3 }
  0xa3   : > { %2005 = vmatpush1.bf16.xpose.msra.mxu0 %v2004_v12 }
  0xa4   : > { %2037 = vmatpush1.bf16.xpose.msra.mxu1 %v2036_v13  ;;  %2007 = vmatprep.subr.bf16.mxu0 %v2006_v14 }
  0xa5   : > { %2039 = vmatprep.subr.bf16.mxu1 %v2038_v15 }
  0xab   : > { %2009 = vmatpush1.bf16.xpose.msra.mxu0 %v2008_v24 }
  0xac   : > { %2041 = vmatpush1.bf16.xpose.msra.mxu1 %v2040_v25  ;;  %2011 = vmatprep.subr.bf16.mxu0 %v2010_v26 }
  0xad   : > { %2043 = vmatprep.subr.bf16.mxu1 %v2042_v27 }
  0xb3   : > { %2013 = vmatpush1.bf16.xpose.msra.mxu0 %v2012_v32 }
  0xb4   : > { %2045 = vmatpush1.bf16.xpose.msra.mxu1 %v2044_v33 }
  0xba   : > { %419 = vmatmul.mubr.f32.vlgmr.msra.gmra.mrb[0].mxu0 %v266_v34 }
  0xbb   : > { %514 = vmatmul.mubr.f32.vlgmr.msra.gmra.mrb[0].mxu1 %v278_v35  ;;  %423 = vmatprep.mubr.f32.mxu0 %v269_v36 }
  0xbc   : > { %518 = vmatprep.mubr.f32.mxu1 %v281_v37 }
  0xbe   : > { %424 = vmatmul.mubr.f32.gmra.mrb[2].mxu0 %v268_v38 }
  0xbf   : > { %519 = vmatmul.mubr.f32.gmra.mrb[2].mxu1 %v280_v39  ;;  %428 = vmatprep.mubr.f32.mxu0 %v271_v40 }
  0xc0   : > { %523 = vmatprep.mubr.f32.mxu1 %v283_v41 }
  0xc2   : > { %429 = vmatmul.mubr.f32.gmra.mrb[4].mxu0 %v270_v42 }
  0xc3   : > { %524 = vmatmul.mubr.f32.gmra.mrb[4].mxu1 %v282_v43  ;;  %433 = vmatprep.mubr.f32.mxu0 %v273_v44 }
  0xc4   : > { %528 = vmatprep.mubr.f32.mxu1 %v285_v45 }
  0xc6   : > { %434 = vmatmul.mubr.f32.gmra.mrb[6].mxu0 %v272_v46 }
  0xc7   : > { %529 = vmatmul.mubr.f32.gmra.mrb[6].mxu1 %v284_v47  ;;  %438 = vmatprep.mubr.f32.mxu0 %v275_v48 }
  0xc8   : > { %533 = vmatprep.mubr.f32.mxu1 %v287_v49 }
  0xca   : > { %439 = vmatmul.mubr.f32.gmra.mrb[8].mxu0 %v274_v50 }
  0xcb   : > { %534 = vmatmul.mubr.f32.gmra.mrb[8].mxu1 %v286_v51  ;;  %443 = vmatprep.mubr.f32.mxu0 %v277_v52 }
  0xcc   : > { %538 = vmatprep.mubr.f32.mxu1 %v289_v53 }
  0xce   : > { %444 = vmatmul.mubr.f32.gmra.mrb[10].mxu0 %v276_v54 }
  0xcf   : > { %539 = vmatmul.mubr.f32.gmra.mrb[10].mxu1 %v288_v55 }
 0x18d   : > { %v2625_v56 = vpop.f32.mrb[0].mxu0 }
 0x18e   : > { %v2627_v57 = vpop.f32.mrb[0].mxu1  ;;  %v422_v58 = vpop.f32.mrb[1].mxu0  ;;  %v544_v60 = vmul.f32 %v2625_v56, %v2625_v56 }
 0x18f   : > { %v517_v59 = vpop.f32.mrb[1].mxu1  ;;  %v576_v1 = vmul.f32 %v2627_v57, %v2627_v57 }
 0x191   : > { %v2631_v61 = vpop.f32.mrb[2].mxu0 }
 0x192   : > { %v2633_v62 = vpop.f32.mrb[2].mxu1  ;;  %v545_v63 = vmul.f32 %v2631_v61, %v2631_v61  ;;  %v427_v0 = vpop.f32.mrb[3].mxu0 }
 0x193   : > { %v577_v2 = vmul.f32 %v2633_v62, %v2633_v62  ;;  %v522_v3 = vpop.f32.mrb[3].mxu1 }
 0x194   : > { %v548_v4 = vadd.f32 %v545_v63, %v544_v60 }
 0x195   : > { %v580_v5 = vadd.f32 %v577_v2, %v576_v1  ;;  %v2641_v6 = vpop.f32.mrb[4].mxu0 }
 0x196   : > { %v2643_v7 = vpop.f32.mrb[4].mxu1  ;;  %v546_v8 = vmul.f32 %v2641_v6, %v2641_v6  ;;  %v432_v9 = vpop.f32.mrb[5].mxu0 }
 0x197   : > { %v578_v10 = vmul.f32 %v2643_v7, %v2643_v7  ;;  %v527_v11 = vpop.f32.mrb[5].mxu1 }
 0x198   : > { %v549_v12 = vadd.f32 %v548_v4, %v546_v8 }
 0x199   : > { %v581_v13 = vadd.f32 %v580_v5, %v578_v10  ;;  %v435_v14 = vpop.f32.mrb[6].mxu0 }
 0x19a   : > { %v547_v15 = vmul.f32 %v435_v14, %v435_v14  ;;  %v530_v16 = vpop.f32.mrb[6].mxu1  ;;  %v437_v17 = vpop.f32.mrb[7].mxu0 }
 0x19b   : > { %v579_v18 = vmul.f32 %v530_v16, %v530_v16  ;;  %v532_v19 = vpop.f32.mrb[7].mxu1 }
 0x19c   : > { %v550_v20 = vadd.f32 %v549_v12, %v547_v15 }
 0x19d   : > { %v582_v21 = vadd.f32 %v581_v13, %v579_v18  ;;  %v440_v22 = vpop.f32.mrb[8].mxu0 }
 0x19e   : > { %v551_v23 = vrot.slane %v550_v20, 4  ;;  %v535_v24 = vpop.f32.mrb[8].mxu1  ;;  %v442_v25 = vpop.f32.mrb[9].mxu0  ;;  %v563_v29 = vmul.f32 %v440_v22, %v440_v22 }
 0x19f   : > { %v583_v26 = vrot.slane %v582_v21, 4  ;;  %v537_v27 = vpop.f32.mrb[9].mxu1  ;;  %v595_v31 = vmul.f32 %v535_v24, %v535_v24 }
 0x1a0   : > { %v552_v28 = vadd.f32 %v551_v23, %v550_v20 }
 0x1a1   : > { %v584_v30 = vadd.f32 %v583_v26, %v582_v21  ;;  %v445_v32 = vpop.f32.mrb[10].mxu0 }
 0x1a2   : > { %v553_v33 = vrot.slane %v552_v28, 2  ;;  %v540_v34 = vpop.f32.mrb[10].mxu1  ;;  %v564_v35 = vmul.f32 %v445_v32, %v445_v32  ;;  %v447_v36 = vpop.f32.mrb[11].mxu0 }
 0x1a3   : > { %v585_v37 = vrot.slane %v584_v30, 2  ;;  %v596_v38 = vmul.f32 %v540_v34, %v540_v34  ;;  %v542_v39 = vpop.f32.mrb[11].mxu1 }
 0x1a4   : > { %v554_v40 = vadd.f32 %v553_v33, %v552_v28  ;;  %v565_v41 = vadd.f32 %v564_v35, %v563_v29 }
 0x1a5   : > { %v586_v42 = vadd.f32 %v585_v37, %v584_v30  ;;  %v597_v43 = vadd.f32 %v596_v38, %v595_v31 }
 0x1a6   : > { %v555_v44 = vrot.slane %v554_v40, 1  ;;  %v566_v45 = vrot.slane %v565_v41, 4 }
 0x1a7   : > { %v587_v46 = vrot.slane %v586_v42, 1  ;;  %v598_v47 = vrot.slane %v597_v43, 4 }
 0x1a8   : > { %v556_v48 = vadd.f32 %v555_v44, %v554_v40  ;;  %v567_v49 = vadd.f32 %v566_v45, %v565_v41 }
 0x1a9   : > { %v588_v50 = vadd.f32 %v587_v46, %v586_v42  ;;  %v599_v51 = vadd.f32 %v598_v47, %v597_v43 }
 0x1aa   : > { %v557_v52 = vmax.f32 %v556_v48, 1e-20  ;;  %v568_v53 = vrot.slane %v567_v49, 2 }
 0x1ab   : > { %v589_v54 = vmax.f32 %v588_v50, 1e-20  ;;  %v600_v55 = vrot.slane %v599_v51, 2 }
 0x1ac   : > { %2132 = vrsqrt.f32 %v557_v52  ;;  %v569_v58 = vadd.f32 %v568_v53, %v567_v49 }
 0x1ad   : > { %2134 = vrsqrt.f32 %v589_v54  ;;  %v601_v59 = vadd.f32 %v600_v55, %v599_v51 }
 0x1ae   : > { %v570_v60 = vrot.slane %v569_v58, 1 }
 0x1af   : > { %v602_v63 = vrot.slane %v601_v59, 1 }
 0x1b0   : > { %v571_v0 = vadd.f32 %v570_v60, %v569_v58 }
 0x1b1   : > { %v603_v1 = vadd.f32 %v602_v63, %v601_v59 }
 0x1b2   : > { %v572_v2 = vmax.f32 %v571_v0, 1e-20 }
 0x1b3   : > { %v604_v3 = vmax.f32 %v603_v1, 1e-20 }
 0x1b4   : > { %2136 = vrsqrt.f32 %v572_v2 }
 0x1b5   : > { %2138 = vrsqrt.f32 %v604_v3 }
 0x1b6   : > { %v2133_v4 = vpop.eup %2132 }
 0x1b7   : > { %v2135_v5 = vpop.eup %2134  ;;  %v2649_v8 = vmul.f32 %v2133_v4, %v435_v14  ;;  %v2652_v9 = vmul.f32 %v2133_v4, %v2631_v61  ;;  %v2655_v10 = vmul.f32 %v2133_v4, %v2625_v56  ;;  %v2658_v11 = vmul.f32 %v2133_v4, %v2641_v6 }
 0x1b8   : > { %v594_v12 = vmul.f32 %v2135_v5, %v530_v16  ;;  %v593_v13 = vmul.f32 %v2135_v5, %v2643_v7  ;;  %v591_v15 = vmul.f32 %v2135_v5, %v2627_v57  ;;  %v592_v17 = vmul.f32 %v2135_v5, %v2633_v62 }
 0x1ba   : > { %620 = vadd.xlane.f32.xlu1 %v593_v13  ;;  %616 = vadd.xlane.f32.xlu0 %v591_v15 }
 0x1be   : > { %v2137_v14 = vpop.eup %2136  ;;  %622 = vadd.xlane.f32.xlu1 %v594_v12  ;;  %618 = vadd.xlane.f32.xlu0 %v592_v17 }
 0x1bf   : > { %v2139_v61 = vpop.eup %2138  ;;  %v574_v18 = vmul.f32 %v2137_v14, %v440_v22  ;;  %v575_v19 = vmul.f32 %v2137_v14, %v445_v32 }
 0x1c0   : > { %v606_v56 = vmul.f32 %v2139_v61, %v535_v24  ;;  %v607_v20 = vmul.f32 %v2139_v61, %v540_v34 }
 0x1c1   : > { %v2663_v21 = vpack.c.bf16 %v575_v19, %v574_v18 }
 0x1c2   : > { %v2046_v6 = vpack.c.bf16 %v607_v20, %v606_v56  ;;  %610 = vadd.xlane.f32.xlu1 %v2652_v9  ;;  %608 = vadd.xlane.f32.xlu0 %v2655_v10 }
 0x1c4   : > { %2047 = vmatprep.subr.bf16.mxu0 %v2046_v6 }
 0x1c5   : > { %2049 = vmatpush3.bf16.msra.mxu0 %v2046_v6 }
 0x1c6   : > { %614 = vadd.xlane.f32.xlu1 %v2649_v8  ;;  %612 = vadd.xlane.f32.xlu0 %v2658_v11 }
 0x1c7   : > { %2059 = vmatprep.subr.bf16.mxu0 %v2663_v21 }
 0x1f3   : > { %637 = vxpose.xlu0.b32.start [1/2] (short) %v574_v18, 128 }
 0x1f7   : > { %638 = vxpose.xlu0.b32.end [2/2] (short) %v575_v19, 128 }
 0x1f9   : > { %908 = vxpose.xlu1.b32.start [1/4] (short) %v2655_v10, 128 }
 0x1fd   : > { %909 = vxpose.xlu1.b32.cont [2/4] (short) %v2652_v9, 128 }
 0x201   : > { %910 = vxpose.xlu1.b32.cont [3/4] (short) %v2658_v11, 128 }
 0x205   : > { %911 = vxpose.xlu1.b32.end [4/4] (short) %v2649_v8, 128 }
 0x247   : > { %v621_v57 = vpop.xlane.xlu1 %620  ;;  %v617_v62 = vpop.xlane.xlu0 %616 }
 0x248   : > { %v900_v7 = vmul.f32 0.008264462, %v617_v62  ;;  %v902_v25 = vmul.f32 0.008264462, %v621_v57 }
 0x24a   : > { %v904_v27 = vsub.f32 %v591_v15, %v900_v7  ;;  %v906_v35 = vsub.f32 %v593_v13, %v902_v25 }
 0x24b   : > { %v623_v16 = vpop.xlane.xlu1 %622  ;;  %v619_v22 = vpop.xlane.xlu0 %618 }
 0x24c   : > { %v903_v23 = vmul.f32 0.008264462, %v623_v16  ;;  %v901_v24 = vmul.f32 0.008264462, %v619_v22 }
 0x24e   : > { %v905_v26 = vsub.f32 %v592_v17, %v901_v24  ;;  %v907_v28 = vsub.f32 %v594_v12, %v903_v23 }
 0x24f   : > { %v611_v29 = vpop.xlane.xlu1 %610  ;;  %v609_v30 = vpop.xlane.xlu0 %608 }
 0x250   : > { %v625_v31 = vmul.f32 %v611_v29, %v592_v17  ;;  %v1172_v32 = vmul.f32 %v611_v29, %v2652_v9  ;;  %v1367_v33 = vmul.f32 0.008264462, %v611_v29  ;;  %v624_v34 = vmul.f32 %v609_v30, %v591_v15 }
 0x251   : > { %v1171_v36 = vmul.f32 %v609_v30, %v2655_v10  ;;  %v1366_v37 = vmul.f32 0.008264462, %v609_v30  ;;  %v2050_v38 = vpack.c.bf16 %v905_v26, %v904_v27  ;;  %v2054_v45 = vpack.c.bf16 %v907_v28, %v906_v35 }
 0x252   : > { %v628_v39 = vadd.f32 %v625_v31, %v624_v34  ;;  %v1371_v40 = vsub.f32 %v2652_v9, %v1367_v33 }
 0x253   : > { %v1175_v41 = vadd.f32 %v1172_v32, %v1171_v36  ;;  %v1370_v42 = vsub.f32 %v2655_v10, %v1366_v37  ;;  %2051 = vmatprep.subr.bf16.mxu1 %v2050_v38  ;;  %v615_v43 = vpop.xlane.xlu1 %614  ;;  %v613_v44 = vpop.xlane.xlu0 %612 }
 0x254   : > { %2053 = vmatpush3.bf16.msra.mxu1 %v2050_v38  ;;  %v626_v46 = vmul.f32 %v613_v44, %v593_v13  ;;  %v1173_v47 = vmul.f32 %v613_v44, %v2658_v11  ;;  %v627_v48 = vmul.f32 %v615_v43, %v594_v12  ;;  %v1174_v50 = vmul.f32 %v615_v43, %v2649_v8 }
 0x255   : > { %2055 = vmatprep.subr.bf16.mxu1 %v2054_v45  ;;  %v2062_v52 = vpack.c.bf16 %v1371_v40, %v1370_v42  ;;  %v1369_v58 = vmul.f32 0.008264462, %v615_v43  ;;  %v1368_v59 = vmul.f32 0.008264462, %v613_v44 }
 0x256   : > { %v629_v49 = vadd.f32 %v628_v39, %v626_v46  ;;  %v1176_v51 = vadd.f32 %v1175_v41, %v1173_v47 }
 0x257   : > { %v1373_v0 = vsub.f32 %v2649_v8, %v1369_v58  ;;  %v1372_v1 = vsub.f32 %v2658_v11, %v1368_v59 }
 0x258   : > { %v2680_v53 = vadd.f32 %v629_v49, %v627_v48  ;;  %2057 = vmatpush3.bf16.msra.mxu1 %v2054_v45  ;;  %v2682_v54 = vadd.f32 %v1176_v51, %v1174_v50 }
 0x259   : > { %2063 = vmatprep.subr.bf16.mxu1 %v2062_v52  ;;  %v2066_v4 = vpack.c.bf16 %v1373_v0, %v1372_v1 }
 0x273   : > { %v2684_v55 = vpop.trf.xlu0 }
 0x274   : > { %1866 = vmatprep.mubr.msk.f32.mxu0 %vm669_vm0, %v2684_v55 }
 0x277   : > { %v2688_v60 = vpop.trf.xlu0 }
 0x278   : > { %1867 = vmatmul.mubr.msk.f32.vlgmr.msra.gmra.mrb[12].mxu0 %vm669_vm0, %v2688_v60 }
 0x279   : > { %2061 = vmatpush3.bf16.msra.mxu0 %v2663_v21  ;;  %v2693_v63 = vpop.trf.xlu1 }
 0x27a   : > { %1898 = vmatprep.mubr.msk.f32.mxu1 %vm940_vm1, %v2693_v63 }
 0x27b   : > { %v2699_v2 = vpop.trf.xlu0 }
 0x27c   : > { %1869 = vmatprep.mubr.msk.f32.mxu0 %vm669_vm0, %v2699_v2 }
 0x27d   : > { %v2703_v3 = vpop.trf.xlu1 }
 0x27e   : > { %1899 = vmatmul.mubr.msk.f32.vlgmr.msra.gmra.mrb[12].mxu1 %vm940_vm1, %v2703_v3 }
 0x27f   : > { %2065 = vmatpush3.bf16.msra.mxu1 %v2062_v52  ;;  %v656_v5 = vpop.trf.xlu0 }
 0x280   : > { %2067 = vmatprep.subr.bf16.mxu1 %v2066_v4  ;;  %1870 = vmatmul.mubr.msk.f32.gmra.mrb[14].mxu0 %vm669_vm0, %v656_v5 }
 0x281   : > { %v926_v8 = vpop.trf.xlu1 }
 0x282   : > { %1901 = vmatprep.mubr.msk.f32.mxu1 %vm940_vm1, %v926_v8 }
 0x283   : > { %2069 = vmatpush3.bf16.msra.mxu1 %v2066_v4  ;;  %v657_v9 = vpop.trf.xlu0 }
 0x284   : > { %1872 = vmatprep.mubr.msk.f32.mxu0 %vm669_vm0, %v657_v9 }
 0x285   : > { %v927_v10 = vpop.trf.xlu1 }
 0x286   : > { %1902 = vmatmul.mubr.msk.f32.gmra.mrb[14].mxu1 %vm940_vm1, %v927_v10 }
 0x287   : > { %v658_v11 = vpop.trf.xlu0 }
 0x288   : > { %1873 = vmatmul.mubr.msk.f32.gmra.mrb[16].mxu0 %vm669_vm0, %v658_v11 }
 0x289   : > { %v928_v12 = vpop.trf.xlu1 }
 0x28a   : > { %1904 = vmatprep.mubr.msk.f32.mxu1 %vm940_vm1, %v928_v12 }
 0x28b   : > { %v659_v13 = vpop.trf.xlu0 }
 0x28c   : > { %1875 = vmatprep.mubr.msk.f32.mxu0 %vm669_vm0, %v659_v13 }
 0x28d   : > { %v929_v15 = vpop.trf.xlu1 }
 0x28e   : > { %1905 = vmatmul.mubr.msk.f32.gmra.mrb[16].mxu1 %vm940_vm1, %v929_v15 }
 0x28f   : > { %v660_v17 = vpop.trf.xlu0 }
 0x290   : > { %1876 = vmatmul.mubr.msk.f32.gmra.mrb[18].mxu0 %vm669_vm0, %v660_v17 }
 0x291   : > { %v930_v14 = vpop.trf.xlu1 }
 0x292   : > { %1907 = vmatprep.mubr.msk.f32.mxu1 %vm940_vm1, %v930_v14 }
 0x293   : > { %v661_v61 = vpop.trf.xlu0 }
 0x294   : > { %1878 = vmatprep.mubr.msk.f32.mxu0 %vm669_vm0, %v661_v61 }
 0x295   : > { %v931_v18 = vpop.trf.xlu1 }
 0x296   : > { %1908 = vmatmul.mubr.msk.f32.gmra.mrb[18].mxu1 %vm940_vm1, %v931_v18 }
 0x297   : > { %v662_v19 = vpop.trf.xlu0 }
 0x298   : > { %1879 = vmatmul.mubr.msk.f32.gmra.mrb[20].mxu0 %vm669_vm0, %v662_v19 }
 0x299   : > { %v932_v56 = vpop.trf.xlu1 }
 0x29a   : > { %1910 = vmatprep.mubr.msk.f32.mxu1 %vm940_vm1, %v932_v56 }
 0x29b   : > { %v663_v20 = vpop.trf.xlu0 }
 0x29c   : > { %1881 = vmatprep.mubr.msk.f32.mxu0 %vm669_vm0, %v663_v20 }
 0x29d   : > { %v933_v21 = vpop.trf.xlu1 }
 0x29e   : > { %1911 = vmatmul.mubr.msk.f32.gmra.mrb[20].mxu1 %vm940_vm1, %v933_v21 }
 0x29f   : > { %v664_v6 = vpop.trf.xlu0 }
 0x2a0   : > { %1882 = vmatmul.mubr.msk.f32.gmra.mrb[22].mxu0 %vm669_vm0, %v664_v6 }
 0x2a1   : > { %v934_v57 = vpop.trf.xlu1 }
 0x2a2   : > { %1913 = vmatprep.mubr.msk.f32.mxu1 %vm940_vm1, %v934_v57 }
 0x2a3   : > { %v665_v62 = vpop.trf.xlu0 }
 0x2a4   : > { %1884 = vmatprep.mubr.msk.f32.mxu0 %vm669_vm0, %v665_v62 }
 0x2a5   : > { %v935_v7 = vpop.trf.xlu1 }
 0x2a6   : > { %1914 = vmatmul.mubr.msk.f32.gmra.mrb[22].mxu1 %vm940_vm1, %v935_v7 }
 0x2a7   : > { %v666_v16 = vpop.trf.xlu0 }
 0x2a8   : > { %1885 = vmatmul.mubr.msk.f32.gmra.mrb[24].mxu0 %vm669_vm0, %v666_v16 }
 0x2a9   : > { %v936_v22 = vpop.trf.xlu1 }
 0x2aa   : > { %1916 = vmatprep.mubr.msk.f32.mxu1 %vm940_vm1, %v936_v22 }
 0x2ab   : > { %v667_v23 = vpop.trf.xlu0 }
 0x2ac   : > { %1887 = vmatprep.mubr.msk.f32.mxu0 %vm669_vm0, %v667_v23 }
 0x2ad   : > { %v937_v24 = vpop.trf.xlu1 }
 0x2ae   : > { %1917 = vmatmul.mubr.msk.f32.gmra.mrb[24].mxu1 %vm940_vm1, %v937_v24 }
 0x2af   : > { %v668_v25 = vpop.trf.xlu0 }
 0x2b0   : > { %1888 = vmatmul.mubr.msk.f32.gmra.mrb[26].mxu0 %vm669_vm0, %v668_v25 }
 0x2b1   : > { %v938_v26 = vpop.trf.xlu1  ;;  %1926 = vmatprep.mubr.msk.f32.mxu0 %vm669_vm0, %v2684_v55 }
 0x2b2   : > { %1919 = vmatprep.mubr.msk.f32.mxu1 %vm940_vm1, %v938_v26 }
 0x2b4   : > { %1927 = vmatmul.mubr.msk.f32.vlgmr.msra.gmra.mrb[28].mxu0 %vm669_vm0, %v2688_v60 }
 0x2b5   : > { %v939_v27 = vpop.trf.xlu1  ;;  %1929 = vmatprep.mubr.msk.f32.mxu0 %vm669_vm0, %v2699_v2 }
 0x2b6   : > { %1920 = vmatmul.mubr.msk.f32.gmra.mrb[26].mxu1 %vm940_vm1, %v939_v27 }
 0x2b7   : > { %1958 = vmatprep.mubr.msk.f32.mxu1 %vm940_vm1, %v2693_v63 }
 0x2b8   : > { %1930 = vmatmul.mubr.msk.f32.gmra.mrb[30].mxu0 %vm669_vm0, %v656_v5 }
 0x2b9   : > { %1932 = vmatprep.mubr.msk.f32.mxu0 %vm669_vm0, %v657_v9 }
 0x2ba   : > { %1959 = vmatmul.mubr.msk.f32.vlgmr.msra.gmra.mrb[28].mxu1 %vm940_vm1, %v2703_v3 }
 0x2bb   : > { %1961 = vmatprep.mubr.msk.f32.mxu1 %vm940_vm1, %v926_v8 }
 0x2bc   : > { %1933 = vmatmul.mubr.msk.f32.gmra.mrb[32].mxu0 %vm669_vm0, %v658_v11 }
 0x2bd   : > { %1935 = vmatprep.mubr.msk.f32.mxu0 %vm669_vm0, %v659_v13 }
 0x2be   : > { %1962 = vmatmul.mubr.msk.f32.gmra.mrb[30].mxu1 %vm940_vm1, %v927_v10 }
 0x2bf   : > { %1964 = vmatprep.mubr.msk.f32.mxu1 %vm940_vm1, %v928_v12 }
 0x2c0   : > { %1936 = vmatmul.mubr.msk.f32.gmra.mrb[34].mxu0 %vm669_vm0, %v660_v17 }
 0x2c1   : > { %1938 = vmatprep.mubr.msk.f32.mxu0 %vm669_vm0, %v661_v61 }
 0x2c2   : > { %1965 = vmatmul.mubr.msk.f32.gmra.mrb[32].mxu1 %vm940_vm1, %v929_v15 }
 0x2c3   : > { %1967 = vmatprep.mubr.msk.f32.mxu1 %vm940_vm1, %v930_v14 }
 0x2c4   : > { %1939 = vmatmul.mubr.msk.f32.gmra.mrb[36].mxu0 %vm669_vm0, %v662_v19 }
 0x2c5   : > { %1941 = vmatprep.mubr.msk.f32.mxu0 %vm669_vm0, %v663_v20 }
 0x2c6   : > { %1968 = vmatmul.mubr.msk.f32.gmra.mrb[34].mxu1 %vm940_vm1, %v931_v18 }
 0x2c7   : > { %1970 = vmatprep.mubr.msk.f32.mxu1 %vm940_vm1, %v932_v56 }
 0x2c8   : > { %1942 = vmatmul.mubr.msk.f32.gmra.mrb[38].mxu0 %vm669_vm0, %v664_v6 }
 0x2c9   : > { %1944 = vmatprep.mubr.msk.f32.mxu0 %vm669_vm0, %v665_v62 }
 0x2ca   : > { %1971 = vmatmul.mubr.msk.f32.gmra.mrb[36].mxu1 %vm940_vm1, %v933_v21 }
 0x2cb   : > { %1973 = vmatprep.mubr.msk.f32.mxu1 %vm940_vm1, %v934_v57 }
 0x2cc   : > { %1945 = vmatmul.mubr.msk.f32.gmra.mrb[40].mxu0 %vm669_vm0, %v666_v16 }
 0x2cd   : > { %1947 = vmatprep.mubr.msk.f32.mxu0 %vm669_vm0, %v667_v23 }
 0x2ce   : > { %1974 = vmatmul.mubr.msk.f32.gmra.mrb[38].mxu1 %vm940_vm1, %v935_v7 }
 0x2cf   : > { %1976 = vmatprep.mubr.msk.f32.mxu1 %vm940_vm1, %v936_v22 }
 0x2d0   : > { %1948 = vmatmul.mubr.msk.f32.gmra.mrb[42].mxu0 %vm669_vm0, %v668_v25 }
 0x2d2   : > { %1977 = vmatmul.mubr.msk.f32.gmra.mrb[40].mxu1 %vm940_vm1, %v937_v24 }
 0x2d3   : > { %1979 = vmatprep.mubr.msk.f32.mxu1 %vm940_vm1, %v938_v26 }
 0x2d6   : > { %1980 = vmatmul.mubr.msk.f32.gmra.mrb[42].mxu1 %vm940_vm1, %v939_v27 }
 0x34b   : > { %v1868_v28 = vpop.f32.mrb[12].mxu0 }
 0x34c   : > { %v864_v29 = vmax.f32 %v1868_v28, 0.0  ;;  %v784_v30 = vpop.f32.mrb[13].mxu0 }
 0x34d   : > { %v863_v31 = vmax.f32 %v784_v30, 0.0 }
 0x34f   : > { %v879_v32 = vadd.f32 %v864_v29, %v863_v31 }
 0x351   : > { %v1900_v33 = vpop.f32.mrb[12].mxu1 }
 0x352   : > { %v1135_v34 = vmul.f32 %v1900_v33, %v864_v29  ;;  %v1055_v35 = vpop.f32.mrb[13].mxu1 }
 0x353   : > { %v1134_v36 = vmul.f32 %v1055_v35, %v863_v31  ;;  %v1871_v37 = vpop.f32.mrb[14].mxu0 }
 0x354   : > { %v794_v38 = vpop.f32.mrb[15].mxu0  ;;  %v866_v40 = vmax.f32 %v1871_v37, 0.0 }
 0x355   : > { %v1150_v39 = vadd.f32 %v1135_v34, %v1134_v36  ;;  %v865_v41 = vmax.f32 %v794_v38, 0.0 }
 0x357   : > { %v880_v42 = vadd.f32 %v879_v32, %v865_v41 }
 0x359   : > { %v1903_v43 = vpop.f32.mrb[14].mxu1  ;;  %v881_v44 = vadd.f32 %v880_v42, %v866_v40 }
 0x35a   : > { %v1137_v45 = vmul.f32 %v1903_v43, %v866_v40  ;;  %v1065_v46 = vpop.f32.mrb[15].mxu1 }
 0x35b   : > { %v1136_v47 = vmul.f32 %v1065_v46, %v865_v41  ;;  %v1874_v48 = vpop.f32.mrb[16].mxu0 }
 0x35c   : > { %v804_v49 = vpop.f32.mrb[17].mxu0  ;;  %v868_v51 = vmax.f32 %v1874_v48, 0.0 }
 0x35d   : > { %v1151_v50 = vadd.f32 %v1150_v39, %v1136_v47  ;;  %v867_v52 = vmax.f32 %v804_v49, 0.0 }
 0x35f   : > { %v882_v55 = vadd.f32 %v881_v44, %v867_v52  ;;  %v1152_v58 = vadd.f32 %v1151_v50, %v1137_v45 }
 0x361   : > { %v1906_v59 = vpop.f32.mrb[16].mxu1  ;;  %v883_v60 = vadd.f32 %v882_v55, %v868_v51 }
 0x362   : > { %v1139_v63 = vmul.f32 %v1906_v59, %v868_v51  ;;  %v1075_v0 = vpop.f32.mrb[17].mxu1 }
 0x363   : > { %v1138_v1 = vmul.f32 %v1075_v0, %v867_v52  ;;  %v1877_v2 = vpop.f32.mrb[18].mxu0 }
 0x364   : > { %v814_v3 = vpop.f32.mrb[19].mxu0  ;;  %v870_v5 = vmax.f32 %v1877_v2, 0.0 }
 0x365   : > { %v1153_v4 = vadd.f32 %v1152_v58, %v1138_v1  ;;  %v869_v8 = vmax.f32 %v814_v3, 0.0  ;;  %v631_v58 = vrot.slane %v2680_v53, 4 }
 0x367   : > { %v884_v9 = vadd.f32 %v883_v60, %v869_v8  ;;  %v1154_v10 = vadd.f32 %v1153_v4, %v1139_v63 }
 0x369   : > { %v1909_v11 = vpop.f32.mrb[18].mxu1  ;;  %v885_v12 = vadd.f32 %v884_v9, %v870_v5 }
 0x36a   : > { %v1141_v13 = vmul.f32 %v1909_v11, %v870_v5  ;;  %v1085_v15 = vpop.f32.mrb[19].mxu1 }
 0x36b   : > { %v1140_v17 = vmul.f32 %v1085_v15, %v869_v8  ;;  %v1880_v14 = vpop.f32.mrb[20].mxu0 }
 0x36c   : > { %v824_v61 = vpop.f32.mrb[21].mxu0  ;;  %v872_v19 = vmax.f32 %v1880_v14, 0.0 }
 0x36d   : > { %v1155_v18 = vadd.f32 %v1154_v10, %v1140_v17  ;;  %v871_v56 = vmax.f32 %v824_v61, 0.0  ;;  %v632_v10 = vadd.f32 %v631_v58, %v2680_v53 }
 0x36f   : > { %v886_v20 = vadd.f32 %v885_v12, %v871_v56  ;;  %v1156_v21 = vadd.f32 %v1155_v18, %v1141_v13 }
 0x371   : > { %v1912_v6 = vpop.f32.mrb[20].mxu1  ;;  %v887_v57 = vadd.f32 %v886_v20, %v872_v19 }
 0x372   : > { %v1143_v62 = vmul.f32 %v1912_v6, %v872_v19  ;;  %v1095_v7 = vpop.f32.mrb[21].mxu1  ;;  %v633_v6 = vrot.slane %v632_v10, 2 }
 0x373   : > { %v1142_v16 = vmul.f32 %v1095_v7, %v871_v56  ;;  %v1883_v22 = vpop.f32.mrb[22].mxu0 }
 0x374   : > { %v834_v23 = vpop.f32.mrb[23].mxu0  ;;  %v874_v25 = vmax.f32 %v1883_v22, 0.0 }
 0x375   : > { %v1157_v24 = vadd.f32 %v1156_v21, %v1142_v16  ;;  %v873_v26 = vmax.f32 %v834_v23, 0.0 }
 0x377   : > { %v888_v27 = vadd.f32 %v887_v57, %v873_v26  ;;  %v1158_v28 = vadd.f32 %v1157_v24, %v1143_v62 }
 0x379   : > { %v1915_v29 = vpop.f32.mrb[22].mxu1  ;;  %v889_v30 = vadd.f32 %v888_v27, %v874_v25 }
 0x37a   : > { %v1145_v31 = vmul.f32 %v1915_v29, %v874_v25  ;;  %v1105_v32 = vpop.f32.mrb[23].mxu1 }
 0x37b   : > { %v1144_v33 = vmul.f32 %v1105_v32, %v873_v26  ;;  %v1886_v34 = vpop.f32.mrb[24].mxu0 }
 0x37c   : > { %v844_v35 = vpop.f32.mrb[25].mxu0  ;;  %v876_v37 = vmax.f32 %v1886_v34, 0.0 }
 0x37d   : > { %v1159_v36 = vadd.f32 %v1158_v28, %v1144_v33  ;;  %v875_v38 = vmax.f32 %v844_v35, 0.0 }
 0x37f   : > { %v890_v39 = vadd.f32 %v889_v30, %v875_v38  ;;  %v1160_v40 = vadd.f32 %v1159_v36, %v1145_v31  ;;  %v634_v30 = vadd.f32 %v633_v6, %v632_v10 }
 0x381   : > { %v1918_v41 = vpop.f32.mrb[24].mxu1  ;;  %v891_v42 = vadd.f32 %v890_v39, %v876_v37 }
 0x382   : > { %v1147_v43 = vmul.f32 %v1918_v41, %v876_v37  ;;  %v1115_v44 = vpop.f32.mrb[25].mxu1 }
 0x383   : > { %v1146_v45 = vmul.f32 %v1115_v44, %v875_v38  ;;  %v1889_v46 = vpop.f32.mrb[26].mxu0 }
 0x384   : > { %v854_v47 = vpop.f32.mrb[27].mxu0  ;;  %v878_v49 = vmax.f32 %v1889_v46, 0.0  ;;  %v635_v46 = vrot.slane %v634_v30, 1 }
 0x385   : > { %v1161_v48 = vadd.f32 %v1160_v40, %v1146_v45  ;;  %v877_v50 = vmax.f32 %v854_v47, 0.0 }
 0x387   : > { %v892_v51 = vadd.f32 %v891_v42, %v877_v50  ;;  %v1928_v52 = vpop.f32.mrb[28].mxu0  ;;  %v1162_v55 = vadd.f32 %v1161_v48, %v1147_v43 }
 0x388   : > { %v1330_v59 = vmax.f32 %v1928_v52, 0.0  ;;  %v1250_v60 = vpop.f32.mrb[29].mxu0 }
 0x389   : > { %v893_v63 = vadd.f32 %v892_v51, %v878_v49  ;;  %v1329_v0 = vmax.f32 %v1250_v60, 0.0  ;;  %v1921_v1 = vpop.f32.mrb[26].mxu1 }
 0x38a   : > { %v1149_v2 = vmul.f32 %v1921_v1, %v878_v49  ;;  %v1125_v3 = vpop.f32.mrb[27].mxu1 }
 0x38b   : > { %v894_v4 = vrot.slane %v893_v63, 4  ;;  %v1345_v5 = vadd.f32 %v1330_v59, %v1329_v0  ;;  %v1148_v8 = vmul.f32 %v1125_v3, %v877_v50  ;;  %v1931_v9 = vpop.f32.mrb[30].mxu0 }
 0x38c   : > { %v1260_v11 = vpop.f32.mrb[31].mxu0  ;;  %v1332_v57 = vmax.f32 %v1931_v9, 0.0 }
 0x38d   : > { %v895_v12 = vadd.f32 %v894_v4, %v893_v63  ;;  %v1163_v13 = vadd.f32 %v1162_v55, %v1148_v8  ;;  %v1331_v15 = vmax.f32 %v1260_v11, 0.0  ;;  %v1960_v17 = vpop.f32.mrb[28].mxu1  ;;  %v636_v4 = vadd.f32 %v635_v46, %v634_v30 }
 0x38e   : > { %v1520_v14 = vmul.f32 %v1960_v17, %v1330_v59  ;;  %v1440_v61 = vpop.f32.mrb[29].mxu1 }
 0x38f   : > { %v896_v18 = vrot.slane %v895_v12, 2  ;;  %v1164_v19 = vadd.f32 %v1163_v13, %v1149_v2  ;;  %v1346_v56 = vadd.f32 %v1345_v5, %v1331_v15  ;;  %v1519_v20 = vmul.f32 %v1440_v61, %v1329_v0  ;;  %v1934_v21 = vpop.f32.mrb[32].mxu0 }
 0x390   : > { %v1270_v62 = vpop.f32.mrb[33].mxu0  ;;  %v1334_v31 = vmax.f32 %v1934_v21, 0.0 }
 0x391   : > { %v1165_v7 = vrot.slane %v1164_v19, 4  ;;  %v1535_v16 = vadd.f32 %v1520_v14, %v1519_v20  ;;  %v1333_v22 = vmax.f32 %v1270_v62, 0.0  ;;  %v1963_v23 = vpop.f32.mrb[30].mxu1  ;;  %v1347_v53 = vadd.f32 %v1346_v56, %v1332_v57 }
 0x392   : > { %v1522_v24 = vmul.f32 %v1963_v23, %v1332_v57  ;;  %v1450_v25 = vpop.f32.mrb[31].mxu1  ;;  %v897_v26 = vadd.f32 %v896_v18, %v895_v12 }
 0x393   : > { %v1166_v27 = vadd.f32 %v1165_v7, %v1164_v19  ;;  %v1521_v28 = vmul.f32 %v1450_v25, %v1331_v15  ;;  %v1937_v29 = vpop.f32.mrb[34].mxu0  ;;  %v1348_v32 = vadd.f32 %v1347_v53, %v1333_v22 }
 0x394   : > { %v1280_v33 = vpop.f32.mrb[35].mxu0  ;;  %v898_v41 = vrot.slane %v897_v26, 1  ;;  %v1336_v47 = vmax.f32 %v1937_v29, 0.0 }
 0x395   : > { %v1167_v34 = vrot.slane %v1166_v27, 2  ;;  %v1536_v35 = vadd.f32 %v1535_v16, %v1521_v28  ;;  %v1335_v36 = vmax.f32 %v1280_v33, 0.0  ;;  %v1966_v37 = vpop.f32.mrb[32].mxu1  ;;  %v1349_v38 = vadd.f32 %v1348_v32, %v1334_v31 }
 0x396   : > { %v1524_v39 = vmul.f32 %v1966_v37, %v1334_v31  ;;  %v1460_v40 = vpop.f32.mrb[33].mxu1  ;;  %v899_v63 = vadd.f32 %v898_v41, %v897_v26 }
 0x397   : > { %v1168_v42 = vadd.f32 %v1167_v34, %v1166_v27  ;;  %v1523_v43 = vmul.f32 %v1460_v40, %v1333_v22  ;;  %v1537_v44 = vadd.f32 %v1536_v35, %v1522_v24  ;;  %v1940_v45 = vpop.f32.mrb[36].mxu0  ;;  %v1350_v48 = vadd.f32 %v1349_v38, %v1335_v36 }
 0x398   : > { %v1290_v49 = vpop.f32.mrb[37].mxu0  ;;  %v1338_v5 = vmax.f32 %v1940_v45, 0.0 }
 0x399   : > { %v1169_v50 = vrot.slane %v1168_v42, 1  ;;  %v1538_v51 = vadd.f32 %v1537_v44, %v1523_v43  ;;  %v1337_v52 = vmax.f32 %v1290_v49, 0.0  ;;  %v1969_v55 = vpop.f32.mrb[34].mxu1  ;;  %v1351_v58 = vadd.f32 %v1350_v48, %v1336_v47 }
 0x39a   : > { %v1526_v59 = vmul.f32 %v1969_v55, %v1336_v47  ;;  %v1470_v60 = vpop.f32.mrb[35].mxu1 }
 0x39b   : > { %v1170_v0 = vadd.f32 %v1169_v50, %v1168_v42  ;;  %v1525_v1 = vmul.f32 %v1470_v60, %v1335_v36  ;;  %v1539_v2 = vadd.f32 %v1538_v51, %v1524_v39  ;;  %v1943_v3 = vpop.f32.mrb[38].mxu0  ;;  %v1352_v8 = vadd.f32 %v1351_v58, %v1337_v52 }
 0x39c   : > { %v1300_v9 = vpop.f32.mrb[39].mxu0  ;;  %v1340_v20 = vmax.f32 %v1943_v3, 0.0  ;;  %v1178_v39 = vrot.slane %v2682_v54, 4 }
 0x39d   : > { %v1563_v10 = vsel %vm1562_vm2, %v1170_v0, %v899_v63  ;;  %v1540_v11 = vadd.f32 %v1539_v2, %v1525_v1  ;;  %v1339_v12 = vmax.f32 %v1300_v9, 0.0  ;;  %v1972_v13 = vpop.f32.mrb[36].mxu1  ;;  %v1353_v15 = vadd.f32 %v1352_v8, %v1338_v5 }
 0x39e   : > { %v1528_v17 = vmul.f32 %v1972_v13, %v1338_v5  ;;  %v1480_v14 = vpop.f32.mrb[37].mxu1  ;;  %v2774_v61 = vsel %vm1564_vm3, %v1563_v10, %v636_v4  ;;  %v1179_v48 = vadd.f32 %v1178_v39, %v2682_v54 }
 0x39f   : > { %v1527_v18 = vmul.f32 %v1480_v14, %v1337_v52  ;;  %v1541_v19 = vadd.f32 %v1540_v11, %v1526_v59  ;;  %v1946_v56 = vpop.f32.mrb[40].mxu0  ;;  %v1354_v21 = vadd.f32 %v1353_v15, %v1339_v12 }
 0x3a0   : > { %v1310_v6 = vpop.f32.mrb[41].mxu0  ;;  %v1342_v26 = vmax.f32 %v1946_v56, 0.0  ;;  %v1180_v55 = vrot.slane %v1179_v48, 2 }
 0x3a1   : > { %v1542_v57 = vadd.f32 %v1541_v19, %v1527_v18  ;;  %v1341_v62 = vmax.f32 %v1310_v6, 0.0  ;;  %v1975_v7 = vpop.f32.mrb[38].mxu1  ;;  %v1355_v16 = vadd.f32 %v1354_v21, %v1340_v20 }
 0x3a2   : > { %v1530_v22 = vmul.f32 %v1975_v7, %v1340_v20  ;;  %v1490_v23 = vpop.f32.mrb[39].mxu1  ;;  %v1181_v63 = vadd.f32 %v1180_v55, %v1179_v48 }
 0x3a3   : > { %v1529_v53 = vmul.f32 %v1490_v23, %v1339_v12  ;;  %v1543_v24 = vadd.f32 %v1542_v57, %v1528_v17  ;;  %v1949_v25 = vpop.f32.mrb[42].mxu0  ;;  %v1356_v27 = vadd.f32 %v1355_v16, %v1341_v62 }
 0x3a4   : > { %v1320_v28 = vpop.f32.mrb[43].mxu0  ;;  %v1344_v37 = vmax.f32 %v1949_v25, 0.0  ;;  %v1182_v3 = vrot.slane %v1181_v63, 1 }
 0x3a5   : > { %v1544_v29 = vadd.f32 %v1543_v24, %v1529_v53  ;;  %v1343_v30 = vmax.f32 %v1320_v28, 0.0  ;;  %v1978_v31 = vpop.f32.mrb[40].mxu1  ;;  %v1357_v32 = vadd.f32 %v1356_v27, %v1342_v26 }
 0x3a6   : > { %v1532_v33 = vmul.f32 %v1978_v31, %v1342_v26  ;;  %v1500_v34 = vpop.f32.mrb[41].mxu1  ;;  %v1183_v8 = vadd.f32 %v1182_v3, %v1181_v63 }
 0x3a7   : > { %v1531_v35 = vmul.f32 %v1500_v34, %v1341_v62  ;;  %v1545_v36 = vadd.f32 %v1544_v29, %v1530_v22  ;;  %v1358_v38 = vadd.f32 %v1357_v32, %v1343_v30 }
 0x3a9   : > { %v1546_v40 = vadd.f32 %v1545_v36, %v1531_v35  ;;  %v1981_v41 = vpop.f32.mrb[42].mxu1  ;;  %v1359_v42 = vadd.f32 %v1358_v38, %v1344_v37 }
 0x3aa   : > { %v1534_v43 = vmul.f32 %v1981_v41, %v1344_v37  ;;  %v1510_v44 = vpop.f32.mrb[43].mxu1 }
 0x3ab   : > { %v1533_v45 = vmul.f32 %v1510_v44, %v1343_v30  ;;  %v1547_v46 = vadd.f32 %v1546_v40, %v1532_v33  ;;  %v1360_v47 = vrot.slane %v1359_v42, 4 }
 0x3ad   : > { %v1548_v49 = vadd.f32 %v1547_v46, %v1533_v45  ;;  %v1361_v50 = vadd.f32 %v1360_v47, %v1359_v42 }
 0x3af   : > { %v1549_v51 = vadd.f32 %v1548_v49, %v1534_v43  ;;  %v1362_v52 = vrot.slane %v1361_v50, 2 }
 0x3b1   : > { %v1550_v58 = vrot.slane %v1549_v51, 4  ;;  %v1363_v60 = vadd.f32 %v1362_v52, %v1361_v50 }
 0x3b3   : > { %v1551_v59 = vadd.f32 %v1550_v58, %v1549_v51  ;;  %v1364_v2 = vrot.slane %v1363_v60, 1 }
 0x3b5   : > { %v1552_v0 = vrot.slane %v1551_v59, 2  ;;  %v1365_v54 = vadd.f32 %v1364_v2, %v1363_v60 }
 0x3b7   : > { %v1553_v1 = vadd.f32 %v1552_v0, %v1551_v59 }
 0x3b9   : > { %v1554_v4 = vrot.slane %v1553_v1, 1 }
 0x3bb   : > { %v1555_v5 = vadd.f32 %v1554_v4, %v1553_v1 }
 0x3bd   : > { %v1567_v9 = vsel %vm1566_vm4, %v2774_v61, %v1555_v5 }
 0x3be   : > { %v1569_v10 = vsel %vm1568_vm5, %v1567_v9, %v1365_v54 }
 0x3bf   : > { %v1571_v11 = vsel %vm1570_vm6, %v1569_v10, %v1183_v8 }
 0x3c0   : > { %v1573_v12 = vsel %vm1572_vm7, %v1571_v11, 0.0 }
 0x3c1   : > { %1574 = vst [vmem:[%s265_s7] sm:$0xff] %v1573_v12 }
 0x3c2   : > { %2243 = shalt.err (!%p2240_p10)
}
 0x3c3   : > { %s2244_s10 = scalar_lea.hbm %s2784_s25, 128  ;;  %s2248_s26 = scalar_lea.hbm %s2831_s3, 256 }
 0x3c4   : > { %p2245_p7 = scmp.ne.s32.totalorder %s2784_s25, %s2244_s10  ;;  %p2249_p4 = scmp.lt.u32.totalorder %s2784_s25, %s2831_s3 }
 0x3c5   : > { %p2250_p1 = scmp.lt.u32.totalorder %s2248_s26, %s2244_s10  ;;  %p2252_p13 = scmp.lt.u32.totalorder %s2244_s10, %s2784_s25 }
 0x3c6   : > { %p2246_p11 = pnand %p2245_p7, %p2850_p5 }
 0x3c7   : > { %p2251_p0 = por %p2250_p1, %p2249_p4 }
 0x3c8   : > { %p2247_p2 = pneg %p2246_p11 }
 0x3c9   : > { %p2253_p6 = por %p2252_p13, %p2251_p0 }
 0x3cb   : > { %p2254_p9 = pnand %p2253_p6, %p2247_p2 }
 0x3cd   : > { %2257 = shalt.err (!%p2254_p9)
}
 0x3ce   : > { %2079 = dma.vmem_to_hbm [thread:$0]  (%p2850_p5), %s2786_s1, 128, %s2784_s25, %s1576_s16  }
 0x3cf PF: > { %s1601_s4 = sand.u32 1, %s2288_s12   ;;  %p2851_p12 = scmp.ne.s32.totalorder %s2841_s24, 0 }
 0x3d0   : > { %p2852_p3 = scmp.ge.s32.totalorder %s2300_s15, 2  ;;  %s1602_s11 = scalar_lea.sflag [#allocation4], %s1601_s4 }
 0x3d2   : > { %p2092_p8 = pnand %p2852_p3, %p2851_p12 }
 0x3d4   : > { %2283 = dma.done.wait (!%p2092_p8), %s1602_s11, 128  }
 0x3d5   : > { %2285 = vsyncadd (!%p2092_p8), %s1602_s11, 4294967168  ;;  %p19_p10 = scmp.ge.s32.totalorder %s2353_s18, 4   ;;  %s2853_s12 = smov %s2292_s13 }
 0x3d6   : > { %s2854_s13 = smov %s2296_s14  ;;  %s2855_s14 = smov %s2365_s21 }
 0x3d7   : > { %s2856_s15 = smov %s2353_s18  ;;  %21 = sbr.rel (!%p19_p10) target bundleno = 9 (0x9), region = 101 }
 0x3de   :  { %1607 = vsyncpa [#allocation3], 1 }
 0x3df   :  { %1609 = vsyncpa [#allocation3 + $0x1], 1 }
 0x3e0   :  { %1610 = vsyncpa [#allocation6], 1 }
 0x3e1   :  { %1612 = vsyncpa [#allocation6 + $0x1], 1 }
 0x3e2   :  { %1613 = vsyncpa [#allocation4], 1 }
 0x3e3   :  { %1615 = vsyncpa [#allocation4 + $0x1], 1 }

</bundles_post_ra>
